<compile_context>
chip_gen: v5e
topology: v5e:2x2
jax: 0.10.0
libtpu: 0.0.40
codegen_flags: <defaults>
</compile_context>

<pallas_src>
import jax
import jax.numpy as jnp
from jax import lax
from jax.experimental import pallas as pl
from jax.experimental.pallas import tpu as pltpu

EPS = 1e-5


# --------------------------------------------------------------------------
# Kernel
# --------------------------------------------------------------------------
def basic_block_kernel(x_ref, wb1_ref, g1_ref, b1_ref, wb2_ref, g2_ref, b2_ref,
                       out_ref, pad_ref):
    # x_ref:    (N, H, W*C)           input, lane-dense NHWC view
    # wb*_ref:  (3, W*C, W*C)         banded conv weights (one per kh tap)
    # g*/b*:    (1, C)                batchnorm gamma / beta
    # out_ref:  (N, H, W*C)
    # pad_ref:  (N, H+2, W*C)  VMEM   single reused row-halo padded buffer
    N, H, WC = x_ref.shape
    C = g1_ref.shape[1]
    W = WC // C
    NH = N * H
    inv_count = 1.0 / float(N * H * W)      # BN population size per channel

    # ---- zero the row halo ONCE (interior rows are always fully written;
    #      W-side padding is folded into the banded weights) -----------------
    zrow = jnp.zeros((N, 1, WC), jnp.float32)
    pad_ref[:, 0:1, :] = zrow
    pad_ref[:, H + 1:H + 2, :] = zrow

    def conv3x3(wb_ref):
        # 3 lane-dense MXU matmuls (K = W*C), accumulator seeded by tap 0.
        rows = pad_ref[:, 0:H, :].reshape(NH, WC)
        acc = jnp.dot(rows, wb_ref[0], preferred_element_type=jnp.float32)
        for dy in (1, 2):
            rows = pad_ref[:, dy:dy + H, :].reshape(NH, WC)
            acc = acc + jnp.dot(rows, wb_ref[dy],
                                preferred_element_type=jnp.float32)
        return acc                                    # (NH, W*C) f32

    def group_sum(v):
        # (1, W*C) -> (1, C): sum the W width-position lane groups per channel.
        acc = v[:, 0:C]
        for w in range(1, W):
            acc = acc + v[:, w * C:(w + 1) * C]
        return acc

    def bn(y, g_ref, b_ref):
        # Single-pass training-mode BN: sum & sum-of-squares in one read of y,
        # then one fused multiply-add pass to normalize.
        s_l = jnp.sum(y, axis=0, keepdims=True)           # (1, W*C)
        ss_l = jnp.sum(y * y, axis=0, keepdims=True)      # (1, W*C)
        mean = group_sum(s_l) * inv_count                 # (1, C)
        var = group_sum(ss_l) * inv_count - mean * mean   # (1, C) biased var
        scale = g_ref[...] * lax.rsqrt(var + EPS)         # (1, C)
        shift = b_ref[...] - mean * scale                 # (1, C)
        scale_l = jnp.concatenate([scale] * W, axis=-1)   # (1, W*C)
        shift_l = jnp.concatenate([shift] * W, axis=-1)   # (1, W*C)
        return y * scale_l + shift_l

    # ---- conv1 -> bn1 -> relu ----------------------------------------------
    pad_ref[:, 1:H + 1, :] = x_ref[...].astype(jnp.float32)
    y1 = jnp.maximum(bn(conv3x3(wb1_ref), g1_ref, b1_ref), 0.0)   # (NH, W*C)

    # ---- conv2 -> bn2 (reuse the same pad scratch; halo rows still zero) ---
    pad_ref[:, 1:H + 1, :] = y1.reshape(N, H, WC)
    y2 = bn(conv3x3(wb2_ref), g2_ref, b2_ref)                     # (NH, W*C)

    # ---- residual add + relu, lane-dense store ------------------------------
    res = y2.reshape(N, H, WC) + x_ref[...].astype(jnp.float32)
    out_ref[...] = jnp.maximum(res, 0.0).astype(out_ref.dtype)


# --------------------------------------------------------------------------
# Wrapper / plain-JAX glue
# --------------------------------------------------------------------------
def build_banded_weights(w_oihw, width):
    """OIHW (Cout, Cin, 3, 3) conv weight -> (3, width*Cin, width*Cout).

    B[dy][(w+dx-1)*Cin + ci, w*Cout + co] = w_oihw[co, ci, dy, dx]; taps that
    fall outside [0, width) are dropped, which implements the zero padding
    along W. Built once in plain JAX outside the kernel.
    """
    c_out, c_in, kh, kw = w_oihw.shape
    w = jnp.transpose(w_oihw, (2, 3, 1, 0)).astype(jnp.float32)  # (kh,kw,Ci,Co)
    mats = []
    for dy in range(kh):
        acc = jnp.zeros((width * c_in, width * c_out), jnp.float32)
        for dx in range(kw):
            band = jnp.eye(width, k=1 - dx, dtype=jnp.float32)
            acc = acc + jnp.kron(band, w[dy, dx])
        mats.append(acc)
    return jnp.stack(mats, axis=0)


def basic_block_pallas(x_nhwc, w1_oihw, g1, b1, w2_oihw, g2, b2):
    N, H, W, C = x_nhwc.shape
    x2d = x_nhwc.reshape(N, H, W * C)                 # free: same HBM bytes
    wb1 = build_banded_weights(w1_oihw, W)            # (3, W*C, W*C)
    wb2 = build_banded_weights(w2_oihw, W)

    vmem = pl.BlockSpec(memory_space=pltpu.MemorySpace.VMEM)
    out2d = pl.pallas_call(
        basic_block_kernel,
        out_shape=jax.ShapeDtypeStruct((N, H, W * C), x_nhwc.dtype),
        in_specs=[vmem] * 7,
        out_specs=vmem,
        scratch_shapes=[
            pltpu.VMEM((N, H + 2, W * C), jnp.float32),   # single pad scratch
        ],
    )(x2d, wb1, g1.reshape(1, C), b1.reshape(1, C),
      wb2, g2.reshape(1, C), b2.reshape(1, C))
    return out2d.reshape(N, H, W, C)


# ---------------- plain-JAX reference (NCHW, mirrors the PyTorch module) ----
def basic_block_reference(x, w1, g1, b1, w2, g2, b2):
    def conv(x, w):
        return lax.conv_general_dilated(
            x, w, window_strides=(1, 1), padding=((1, 1), (1, 1)),
            dimension_numbers=('NCHW', 'OIHW', 'NCHW'))

    def bn(y, g, b):
        mean = y.mean(axis=(0, 2, 3), keepdims=True)
        var = ((y - mean) ** 2).mean(axis=(0, 2, 3), keepdims=True)
        yhat = (y - mean) / jnp.sqrt(var + EPS)
        return yhat * g.reshape(1, -1, 1, 1) + b.reshape(1, -1, 1, 1)

    out = jax.nn.relu(bn(conv(x, w1), g1, b1))
    out = bn(conv(out, w2), g2, b2) + x
    return jax.nn.relu(out)


if __name__ == "__main__":
    N, C, H, W = 2, 8, 16, 16          # in_channel == out_channel, stride=1
    key = jax.random.PRNGKey(0)
    kx, kw1, kw2 = jax.random.split(key, 3)

    # PyTorch-convention tensors (NCHW input, OIHW weights), deterministic.
    x_nchw = jax.random.normal(kx, (N, C, H, W), jnp.float32)
    w1_oihw = 0.1 * jax.random.normal(kw1, (C, C, 3, 3), jnp.float32)
    w2_oihw = 0.1 * jax.random.normal(kw2, (C, C, 3, 3), jnp.float32)
    gamma1 = jnp.ones((C,), jnp.float32)   # nn.BatchNorm2d default init
    beta1 = jnp.zeros((C,), jnp.float32)
    gamma2 = jnp.ones((C,), jnp.float32)
    beta2 = jnp.zeros((C,), jnp.float32)

    # Glue: NCHW -> NHWC for the kernel.
    x_nhwc = jnp.transpose(x_nchw, (0, 2, 3, 1))

    out_nhwc = basic_block_pallas(x_nhwc, w1_oihw, gamma1, beta1,
                                  w2_oihw, gamma2, beta2)
    out_nhwc = jax.block_until_ready(out_nhwc)
    out_nchw = jnp.transpose(out_nhwc, (0, 3, 1, 2))

    ref = basic_block_reference(x_nchw, w1_oihw, gamma1, beta1,
                                w2_oihw, gamma2, beta2)

    assert out_nchw.shape == (N, C, H, W)
    assert jnp.allclose(out_nchw, ref, atol=1e-3, rtol=1e-3), \
        float(jnp.max(jnp.abs(out_nchw - ref)))
    print("KERNEL_OK")
</pallas_src>

<mosaic_0001>
module attributes {stable_mosaic.version = 11 : i64} {
  func.func @basic_block_kernel(%arg0: memref<2x16x128xf32, #tpu.memory_space<vmem>>, %arg1: memref<3x128x128xf32, #tpu.memory_space<vmem>>, %arg2: memref<1x8xf32, #tpu.memory_space<vmem>>, %arg3: memref<1x8xf32, #tpu.memory_space<vmem>>, %arg4: memref<3x128x128xf32, #tpu.memory_space<vmem>>, %arg5: memref<1x8xf32, #tpu.memory_space<vmem>>, %arg6: memref<1x8xf32, #tpu.memory_space<vmem>>, %arg7: memref<2x16x128xf32, #tpu.memory_space<vmem>>, %arg8: memref<2x18x128xf32, #tpu.memory_space<vmem>>) attributes {dimension_semantics = [], scalar_prefetch = 0 : i64, scratch_operands = 1 : i64, tpu.core_type = #tpu.core_type<tc>} {
    %cst = arith.constant 0.000000e+00 : f32
    %0 = vector.broadcast %cst : f32 to vector<2x1x128xf32>
    %c0 = arith.constant 0 : index
    %c0_0 = arith.constant 0 : index
    %c0_1 = arith.constant 0 : index
    %1 = vector.load %arg8[%c0, %c0_0, %c0_1] : memref<2x18x128xf32, #tpu.memory_space<vmem>>, vector<2x1x128xf32>
    tpu.vector_store %arg8[%c0, %c0_0, %c0_1], %0 {strides = array<i32>} : memref<2x18x128xf32, #tpu.memory_space<vmem>>, vector<2x1x128xf32>,
    %c0_2 = arith.constant 0 : index
    %c17 = arith.constant 17 : index
    %c0_3 = arith.constant 0 : index
    %2 = vector.load %arg8[%c0_2, %c17, %c0_3] : memref<2x18x128xf32, #tpu.memory_space<vmem>>, vector<2x1x128xf32>
    tpu.vector_store %arg8[%c0_2, %c17, %c0_3], %0 {strides = array<i32>} : memref<2x18x128xf32, #tpu.memory_space<vmem>>, vector<2x1x128xf32>,
    %c0_4 = arith.constant 0 : index
    %c0_5 = arith.constant 0 : index
    %c0_6 = arith.constant 0 : index
    %3 = vector.load %arg0[%c0_4, %c0_5, %c0_6] : memref<2x16x128xf32, #tpu.memory_space<vmem>>, vector<2x16x128xf32>
    %c0_7 = arith.constant 0 : index
    %c1 = arith.constant 1 : index
    %c0_8 = arith.constant 0 : index
    %4 = vector.load %arg8[%c0_7, %c1, %c0_8] : memref<2x18x128xf32, #tpu.memory_space<vmem>>, vector<2x16x128xf32>
    tpu.vector_store %arg8[%c0_7, %c1, %c0_8], %3 {strides = array<i32>} : memref<2x18x128xf32, #tpu.memory_space<vmem>>, vector<2x16x128xf32>,
    %c0_9 = arith.constant 0 : index
    %c0_10 = arith.constant 0 : index
    %c0_11 = arith.constant 0 : index
    %5 = vector.load %arg8[%c0_9, %c0_10, %c0_11] : memref<2x18x128xf32, #tpu.memory_space<vmem>>, vector<2x16x128xf32>
    %6 = vector.shape_cast %5 : vector<2x16x128xf32> to vector<32x128xf32>
    %c0_12 = arith.constant 0 : index
    %c0_13 = arith.constant 0 : index
    %c0_14 = arith.constant 0 : index
    %7 = vector.load %arg1[%c0_12, %c0_13, %c0_14] : memref<3x128x128xf32, #tpu.memory_space<vmem>>, vector<1x128x128xf32>
    %8 = vector.shape_cast %7 : vector<1x128x128xf32> to vector<128x128xf32>
    %cst_15 = arith.constant dense<0.000000e+00> : vector<32x128xf32>
    %9 = tpu.matmul %6, %8, %cst_15 {dimension_numbers = #tpu.dot_dimension_numbers<[1], [0], [0], [1], [0, 0, 1, 1], [], []>} : vector<32x128xf32>, vector<128x128xf32>, vector<32x128xf32> -> vector<32x128xf32>
    %c0_16 = arith.constant 0 : index
    %c1_17 = arith.constant 1 : index
    %c0_18 = arith.constant 0 : index
    %10 = vector.load %arg8[%c0_16, %c1_17, %c0_18] : memref<2x18x128xf32, #tpu.memory_space<vmem>>, vector<2x16x128xf32>
    %11 = vector.shape_cast %10 : vector<2x16x128xf32> to vector<32x128xf32>
    %c1_19 = arith.constant 1 : index
    %c0_20 = arith.constant 0 : index
    %c0_21 = arith.constant 0 : index
    %12 = vector.load %arg1[%c1_19, %c0_20, %c0_21] : memref<3x128x128xf32, #tpu.memory_space<vmem>>, vector<1x128x128xf32>
    %13 = vector.shape_cast %12 : vector<1x128x128xf32> to vector<128x128xf32>
    %cst_22 = arith.constant dense<0.000000e+00> : vector<32x128xf32>
    %14 = tpu.matmul %11, %13, %cst_22 {dimension_numbers = #tpu.dot_dimension_numbers<[1], [0], [0], [1], [0, 0, 1, 1], [], []>} : vector<32x128xf32>, vector<128x128xf32>, vector<32x128xf32> -> vector<32x128xf32>
    %15 = arith.addf %9, %14 : vector<32x128xf32>
    %c0_23 = arith.constant 0 : index
    %c2 = arith.constant 2 : index
    %c0_24 = arith.constant 0 : index
    %16 = vector.load %arg8[%c0_23, %c2, %c0_24] : memref<2x18x128xf32, #tpu.memory_space<vmem>>, vector<2x16x128xf32>
    %17 = vector.shape_cast %16 : vector<2x16x128xf32> to vector<32x128xf32>
    %c2_25 = arith.constant 2 : index
    %c0_26 = arith.constant 0 : index
    %c0_27 = arith.constant 0 : index
    %18 = vector.load %arg1[%c2_25, %c0_26, %c0_27] : memref<3x128x128xf32, #tpu.memory_space<vmem>>, vector<1x128x128xf32>
    %19 = vector.shape_cast %18 : vector<1x128x128xf32> to vector<128x128xf32>
    %cst_28 = arith.constant dense<0.000000e+00> : vector<32x128xf32>
    %20 = tpu.matmul %17, %19, %cst_28 {dimension_numbers = #tpu.dot_dimension_numbers<[1], [0], [0], [1], [0, 0, 1, 1], [], []>} : vector<32x128xf32>, vector<128x128xf32>, vector<32x128xf32> -> vector<32x128xf32>
    %21 = arith.addf %15, %20 : vector<32x128xf32>
    %cst_29 = arith.constant dense<0.000000e+00> : vector<128xf32>
    %22 = vector.multi_reduction <add>, %21, %cst_29 [0] : vector<32x128xf32> to vector<128xf32>
    %23 = vector.shape_cast %22 : vector<128xf32> to vector<1x128xf32>
    %24 = arith.mulf %21, %21 : vector<32x128xf32>
    %cst_30 = arith.constant dense<0.000000e+00> : vector<128xf32>
    %25 = vector.multi_reduction <add>, %24, %cst_30 [0] : vector<32x128xf32> to vector<128xf32>
    %26 = vector.shape_cast %25 : vector<128xf32> to vector<1x128xf32>
    %27 = vector.extract_strided_slice %23 {offsets = [0, 0], sizes = [1, 8], strides = [1, 1]} : vector<1x128xf32> to vector<1x8xf32>
    %28 = vector.extract_strided_slice %23 {offsets = [0, 8], sizes = [1, 8], strides = [1, 1]} : vector<1x128xf32> to vector<1x8xf32>
    %29 = arith.addf %27, %28 : vector<1x8xf32>
    %30 = vector.extract_strided_slice %23 {offsets = [0, 16], sizes = [1, 8], strides = [1, 1]} : vector<1x128xf32> to vector<1x8xf32>
    %31 = arith.addf %29, %30 : vector<1x8xf32>
    %32 = vector.extract_strided_slice %23 {offsets = [0, 24], sizes = [1, 8], strides = [1, 1]} : vector<1x128xf32> to vector<1x8xf32>
    %33 = arith.addf %31, %32 : vector<1x8xf32>
    %34 = vector.extract_strided_slice %23 {offsets = [0, 32], sizes = [1, 8], strides = [1, 1]} : vector<1x128xf32> to vector<1x8xf32>
    %35 = arith.addf %33, %34 : vector<1x8xf32>
    %36 = vector.extract_strided_slice %23 {offsets = [0, 40], sizes = [1, 8], strides = [1, 1]} : vector<1x128xf32> to vector<1x8xf32>
    %37 = arith.addf %35, %36 : vector<1x8xf32>
    %38 = vector.extract_strided_slice %23 {offsets = [0, 48], sizes = [1, 8], strides = [1, 1]} : vector<1x128xf32> to vector<1x8xf32>
    %39 = arith.addf %37, %38 : vector<1x8xf32>
    %40 = vector.extract_strided_slice %23 {offsets = [0, 56], sizes = [1, 8], strides = [1, 1]} : vector<1x128xf32> to vector<1x8xf32>
    %41 = arith.addf %39, %40 : vector<1x8xf32>
    %42 = vector.extract_strided_slice %23 {offsets = [0, 64], sizes = [1, 8], strides = [1, 1]} : vector<1x128xf32> to vector<1x8xf32>
    %43 = arith.addf %41, %42 : vector<1x8xf32>
    %44 = vector.extract_strided_slice %23 {offsets = [0, 72], sizes = [1, 8], strides = [1, 1]} : vector<1x128xf32> to vector<1x8xf32>
    %45 = arith.addf %43, %44 : vector<1x8xf32>
    %46 = vector.extract_strided_slice %23 {offsets = [0, 80], sizes = [1, 8], strides = [1, 1]} : vector<1x128xf32> to vector<1x8xf32>
    %47 = arith.addf %45, %46 : vector<1x8xf32>
    %48 = vector.extract_strided_slice %23 {offsets = [0, 88], sizes = [1, 8], strides = [1, 1]} : vector<1x128xf32> to vector<1x8xf32>
    %49 = arith.addf %47, %48 : vector<1x8xf32>
    %50 = vector.extract_strided_slice %23 {offsets = [0, 96], sizes = [1, 8], strides = [1, 1]} : vector<1x128xf32> to vector<1x8xf32>
    %51 = arith.addf %49, %50 : vector<1x8xf32>
    %52 = vector.extract_strided_slice %23 {offsets = [0, 104], sizes = [1, 8], strides = [1, 1]} : vector<1x128xf32> to vector<1x8xf32>
    %53 = arith.addf %51, %52 : vector<1x8xf32>
    %54 = vector.extract_strided_slice %23 {offsets = [0, 112], sizes = [1, 8], strides = [1, 1]} : vector<1x128xf32> to vector<1x8xf32>
    %55 = arith.addf %53, %54 : vector<1x8xf32>
    %56 = vector.extract_strided_slice %23 {offsets = [0, 120], sizes = [1, 8], strides = [1, 1]} : vector<1x128xf32> to vector<1x8xf32>
    %57 = arith.addf %55, %56 : vector<1x8xf32>
    %cst_31 = arith.constant 0.001953125 : f32
    %58 = vector.broadcast %cst_31 : f32 to vector<1x8xf32>
    %59 = arith.mulf %57, %58 : vector<1x8xf32>
    %60 = vector.extract_strided_slice %26 {offsets = [0, 0], sizes = [1, 8], strides = [1, 1]} : vector<1x128xf32> to vector<1x8xf32>
    %61 = vector.extract_strided_slice %26 {offsets = [0, 8], sizes = [1, 8], strides = [1, 1]} : vector<1x128xf32> to vector<1x8xf32>
    %62 = arith.addf %60, %61 : vector<1x8xf32>
    %63 = vector.extract_strided_slice %26 {offsets = [0, 16], sizes = [1, 8], strides = [1, 1]} : vector<1x128xf32> to vector<1x8xf32>
    %64 = arith.addf %62, %63 : vector<1x8xf32>
    %65 = vector.extract_strided_slice %26 {offsets = [0, 24], sizes = [1, 8], strides = [1, 1]} : vector<1x128xf32> to vector<1x8xf32>
    %66 = arith.addf %64, %65 : vector<1x8xf32>
    %67 = vector.extract_strided_slice %26 {offsets = [0, 32], sizes = [1, 8], strides = [1, 1]} : vector<1x128xf32> to vector<1x8xf32>
    %68 = arith.addf %66, %67 : vector<1x8xf32>
    %69 = vector.extract_strided_slice %26 {offsets = [0, 40], sizes = [1, 8], strides = [1, 1]} : vector<1x128xf32> to vector<1x8xf32>
    %70 = arith.addf %68, %69 : vector<1x8xf32>
    %71 = vector.extract_strided_slice %26 {offsets = [0, 48], sizes = [1, 8], strides = [1, 1]} : vector<1x128xf32> to vector<1x8xf32>
    %72 = arith.addf %70, %71 : vector<1x8xf32>
    %73 = vector.extract_strided_slice %26 {offsets = [0, 56], sizes = [1, 8], strides = [1, 1]} : vector<1x128xf32> to vector<1x8xf32>
    %74 = arith.addf %72, %73 : vector<1x8xf32>
    %75 = vector.extract_strided_slice %26 {offsets = [0, 64], sizes = [1, 8], strides = [1, 1]} : vector<1x128xf32> to vector<1x8xf32>
    %76 = arith.addf %74, %75 : vector<1x8xf32>
    %77 = vector.extract_strided_slice %26 {offsets = [0, 72], sizes = [1, 8], strides = [1, 1]} : vector<1x128xf32> to vector<1x8xf32>
    %78 = arith.addf %76, %77 : vector<1x8xf32>
    %79 = vector.extract_strided_slice %26 {offsets = [0, 80], sizes = [1, 8], strides = [1, 1]} : vector<1x128xf32> to vector<1x8xf32>
    %80 = arith.addf %78, %79 : vector<1x8xf32>
    %81 = vector.extract_strided_slice %26 {offsets = [0, 88], sizes = [1, 8], strides = [1, 1]} : vector<1x128xf32> to vector<1x8xf32>
    %82 = arith.addf %80, %81 : vector<1x8xf32>
    %83 = vector.extract_strided_slice %26 {offsets = [0, 96], sizes = [1, 8], strides = [1, 1]} : vector<1x128xf32> to vector<1x8xf32>
    %84 = arith.addf %82, %83 : vector<1x8xf32>
    %85 = vector.extract_strided_slice %26 {offsets = [0, 104], sizes = [1, 8], strides = [1, 1]} : vector<1x128xf32> to vector<1x8xf32>
    %86 = arith.addf %84, %85 : vector<1x8xf32>
    %87 = vector.extract_strided_slice %26 {offsets = [0, 112], sizes = [1, 8], strides = [1, 1]} : vector<1x128xf32> to vector<1x8xf32>
    %88 = arith.addf %86, %87 : vector<1x8xf32>
    %89 = vector.extract_strided_slice %26 {offsets = [0, 120], sizes = [1, 8], strides = [1, 1]} : vector<1x128xf32> to vector<1x8xf32>
    %90 = arith.addf %88, %89 : vector<1x8xf32>
    %cst_32 = arith.constant 0.001953125 : f32
    %91 = vector.broadcast %cst_32 : f32 to vector<1x8xf32>
    %92 = arith.mulf %90, %91 : vector<1x8xf32>
    %93 = arith.mulf %59, %59 : vector<1x8xf32>
    %94 = arith.subf %92, %93 : vector<1x8xf32>
    %c0_33 = arith.constant 0 : index
    %c0_34 = arith.constant 0 : index
    %95 = vector.load %arg2[%c0_33, %c0_34] : memref<1x8xf32, #tpu.memory_space<vmem>>, vector<1x8xf32>
    %cst_35 = arith.constant 9.99999974E-6 : f32
    %96 = vector.broadcast %cst_35 : f32 to vector<1x8xf32>
    %97 = arith.addf %94, %96 : vector<1x8xf32>
    %98 = math.rsqrt %97 : vector<1x8xf32>
    %99 = arith.mulf %95, %98 : vector<1x8xf32>
    %c0_36 = arith.constant 0 : index
    %c0_37 = arith.constant 0 : index
    %100 = vector.load %arg3[%c0_36, %c0_37] : memref<1x8xf32, #tpu.memory_space<vmem>>, vector<1x8xf32>
    %101 = arith.mulf %59, %99 : vector<1x8xf32>
    %102 = arith.subf %100, %101 : vector<1x8xf32>
    %103 = tpu.concatenate %99, %99, %99, %99, %99, %99, %99, %99, %99, %99, %99, %99, %99, %99, %99, %99 in 1 : vector<1x8xf32>, vector<1x8xf32>, vector<1x8xf32>, vector<1x8xf32>, vector<1x8xf32>, vector<1x8xf32>, vector<1x8xf32>, vector<1x8xf32>, vector<1x8xf32>, vector<1x8xf32>, vector<1x8xf32>, vector<1x8xf32>, vector<1x8xf32>, vector<1x8xf32>, vector<1x8xf32>, vector<1x8xf32> -> vector<1x128xf32>
    %104 = tpu.concatenate %102, %102, %102, %102, %102, %102, %102, %102, %102, %102, %102, %102, %102, %102, %102, %102 in 1 : vector<1x8xf32>, vector<1x8xf32>, vector<1x8xf32>, vector<1x8xf32>, vector<1x8xf32>, vector<1x8xf32>, vector<1x8xf32>, vector<1x8xf32>, vector<1x8xf32>, vector<1x8xf32>, vector<1x8xf32>, vector<1x8xf32>, vector<1x8xf32>, vector<1x8xf32>, vector<1x8xf32>, vector<1x8xf32> -> vector<1x128xf32>
    %105 = vector.broadcast %103 : vector<1x128xf32> to vector<32x128xf32>
    %106 = arith.mulf %21, %105 : vector<32x128xf32>
    %107 = vector.broadcast %104 : vector<1x128xf32> to vector<32x128xf32>
    %108 = arith.addf %106, %107 : vector<32x128xf32>
    %cst_38 = arith.constant 0.000000e+00 : f32
    %109 = vector.broadcast %cst_38 : f32 to vector<32x128xf32>
    %110 = arith.maximumf %108, %109 : vector<32x128xf32>
    %111 = vector.shape_cast %110 : vector<32x128xf32> to vector<2x16x128xf32>
    %c0_39 = arith.constant 0 : index
    %c1_40 = arith.constant 1 : index
    %c0_41 = arith.constant 0 : index
    %112 = vector.load %arg8[%c0_39, %c1_40, %c0_41] : memref<2x18x128xf32, #tpu.memory_space<vmem>>, vector<2x16x128xf32>
    tpu.vector_store %arg8[%c0_39, %c1_40, %c0_41], %111 {strides = array<i32>} : memref<2x18x128xf32, #tpu.memory_space<vmem>>, vector<2x16x128xf32>,
    %c0_42 = arith.constant 0 : index
    %c0_43 = arith.constant 0 : index
    %c0_44 = arith.constant 0 : index
    %113 = vector.load %arg8[%c0_42, %c0_43, %c0_44] : memref<2x18x128xf32, #tpu.memory_space<vmem>>, vector<2x16x128xf32>
    %114 = vector.shape_cast %113 : vector<2x16x128xf32> to vector<32x128xf32>
    %c0_45 = arith.constant 0 : index
    %c0_46 = arith.constant 0 : index
    %c0_47 = arith.constant 0 : index
    %115 = vector.load %arg4[%c0_45, %c0_46, %c0_47] : memref<3x128x128xf32, #tpu.memory_space<vmem>>, vector<1x128x128xf32>
    %116 = vector.shape_cast %115 : vector<1x128x128xf32> to vector<128x128xf32>
    %cst_48 = arith.constant dense<0.000000e+00> : vector<32x128xf32>
    %117 = tpu.matmul %114, %116, %cst_48 {dimension_numbers = #tpu.dot_dimension_numbers<[1], [0], [0], [1], [0, 0, 1, 1], [], []>} : vector<32x128xf32>, vector<128x128xf32>, vector<32x128xf32> -> vector<32x128xf32>
    %c0_49 = arith.constant 0 : index
    %c1_50 = arith.constant 1 : index
    %c0_51 = arith.constant 0 : index
    %118 = vector.load %arg8[%c0_49, %c1_50, %c0_51] : memref<2x18x128xf32, #tpu.memory_space<vmem>>, vector<2x16x128xf32>
    %119 = vector.shape_cast %118 : vector<2x16x128xf32> to vector<32x128xf32>
    %c1_52 = arith.constant 1 : index
    %c0_53 = arith.constant 0 : index
    %c0_54 = arith.constant 0 : index
    %120 = vector.load %arg4[%c1_52, %c0_53, %c0_54] : memref<3x128x128xf32, #tpu.memory_space<vmem>>, vector<1x128x128xf32>
    %121 = vector.shape_cast %120 : vector<1x128x128xf32> to vector<128x128xf32>
    %cst_55 = arith.constant dense<0.000000e+00> : vector<32x128xf32>
    %122 = tpu.matmul %119, %121, %cst_55 {dimension_numbers = #tpu.dot_dimension_numbers<[1], [0], [0], [1], [0, 0, 1, 1], [], []>} : vector<32x128xf32>, vector<128x128xf32>, vector<32x128xf32> -> vector<32x128xf32>
    %123 = arith.addf %117, %122 : vector<32x128xf32>
    %c0_56 = arith.constant 0 : index
    %c2_57 = arith.constant 2 : index
    %c0_58 = arith.constant 0 : index
    %124 = vector.load %arg8[%c0_56, %c2_57, %c0_58] : memref<2x18x128xf32, #tpu.memory_space<vmem>>, vector<2x16x128xf32>
    %125 = vector.shape_cast %124 : vector<2x16x128xf32> to vector<32x128xf32>
    %c2_59 = arith.constant 2 : index
    %c0_60 = arith.constant 0 : index
    %c0_61 = arith.constant 0 : index
    %126 = vector.load %arg4[%c2_59, %c0_60, %c0_61] : memref<3x128x128xf32, #tpu.memory_space<vmem>>, vector<1x128x128xf32>
    %127 = vector.shape_cast %126 : vector<1x128x128xf32> to vector<128x128xf32>
    %cst_62 = arith.constant dense<0.000000e+00> : vector<32x128xf32>
    %128 = tpu.matmul %125, %127, %cst_62 {dimension_numbers = #tpu.dot_dimension_numbers<[1], [0], [0], [1], [0, 0, 1, 1], [], []>} : vector<32x128xf32>, vector<128x128xf32>, vector<32x128xf32> -> vector<32x128xf32>
    %129 = arith.addf %123, %128 : vector<32x128xf32>
    %cst_63 = arith.constant dense<0.000000e+00> : vector<128xf32>
    %130 = vector.multi_reduction <add>, %129, %cst_63 [0] : vector<32x128xf32> to vector<128xf32>
    %131 = vector.shape_cast %130 : vector<128xf32> to vector<1x128xf32>
    %132 = arith.mulf %129, %129 : vector<32x128xf32>
    %cst_64 = arith.constant dense<0.000000e+00> : vector<128xf32>
    %133 = vector.multi_reduction <add>, %132, %cst_64 [0] : vector<32x128xf32> to vector<128xf32>
    %134 = vector.shape_cast %133 : vector<128xf32> to vector<1x128xf32>
    %135 = vector.extract_strided_slice %131 {offsets = [0, 0], sizes = [1, 8], strides = [1, 1]} : vector<1x128xf32> to vector<1x8xf32>
    %136 = vector.extract_strided_slice %131 {offsets = [0, 8], sizes = [1, 8], strides = [1, 1]} : vector<1x128xf32> to vector<1x8xf32>
    %137 = arith.addf %135, %136 : vector<1x8xf32>
    %138 = vector.extract_strided_slice %131 {offsets = [0, 16], sizes = [1, 8], strides = [1, 1]} : vector<1x128xf32> to vector<1x8xf32>
    %139 = arith.addf %137, %138 : vector<1x8xf32>
    %140 = vector.extract_strided_slice %131 {offsets = [0, 24], sizes = [1, 8], strides = [1, 1]} : vector<1x128xf32> to vector<1x8xf32>
    %141 = arith.addf %139, %140 : vector<1x8xf32>
    %142 = vector.extract_strided_slice %131 {offsets = [0, 32], sizes = [1, 8], strides = [1, 1]} : vector<1x128xf32> to vector<1x8xf32>
    %143 = arith.addf %141, %142 : vector<1x8xf32>
    %144 = vector.extract_strided_slice %131 {offsets = [0, 40], sizes = [1, 8], strides = [1, 1]} : vector<1x128xf32> to vector<1x8xf32>
    %145 = arith.addf %143, %144 : vector<1x8xf32>
    %146 = vector.extract_strided_slice %131 {offsets = [0, 48], sizes = [1, 8], strides = [1, 1]} : vector<1x128xf32> to vector<1x8xf32>
    %147 = arith.addf %145, %146 : vector<1x8xf32>
    %148 = vector.extract_strided_slice %131 {offsets = [0, 56], sizes = [1, 8], strides = [1, 1]} : vector<1x128xf32> to vector<1x8xf32>
    %149 = arith.addf %147, %148 : vector<1x8xf32>
    %150 = vector.extract_strided_slice %131 {offsets = [0, 64], sizes = [1, 8], strides = [1, 1]} : vector<1x128xf32> to vector<1x8xf32>
    %151 = arith.addf %149, %150 : vector<1x8xf32>
    %152 = vector.extract_strided_slice %131 {offsets = [0, 72], sizes = [1, 8], strides = [1, 1]} : vector<1x128xf32> to vector<1x8xf32>
    %153 = arith.addf %151, %152 : vector<1x8xf32>
    %154 = vector.extract_strided_slice %131 {offsets = [0, 80], sizes = [1, 8], strides = [1, 1]} : vector<1x128xf32> to vector<1x8xf32>
    %155 = arith.addf %153, %154 : vector<1x8xf32>
    %156 = vector.extract_strided_slice %131 {offsets = [0, 88], sizes = [1, 8], strides = [1, 1]} : vector<1x128xf32> to vector<1x8xf32>
    %157 = arith.addf %155, %156 : vector<1x8xf32>
    %158 = vector.extract_strided_slice %131 {offsets = [0, 96], sizes = [1, 8], strides = [1, 1]} : vector<1x128xf32> to vector<1x8xf32>
    %159 = arith.addf %157, %158 : vector<1x8xf32>
    %160 = vector.extract_strided_slice %131 {offsets = [0, 104], sizes = [1, 8], strides = [1, 1]} : vector<1x128xf32> to vector<1x8xf32>
    %161 = arith.addf %159, %160 : vector<1x8xf32>
    %162 = vector.extract_strided_slice %131 {offsets = [0, 112], sizes = [1, 8], strides = [1, 1]} : vector<1x128xf32> to vector<1x8xf32>
    %163 = arith.addf %161, %162 : vector<1x8xf32>
    %164 = vector.extract_strided_slice %131 {offsets = [0, 120], sizes = [1, 8], strides = [1, 1]} : vector<1x128xf32> to vector<1x8xf32>
    %165 = arith.addf %163, %164 : vector<1x8xf32>
    %cst_65 = arith.constant 0.001953125 : f32
    %166 = vector.broadcast %cst_65 : f32 to vector<1x8xf32>
    %167 = arith.mulf %165, %166 : vector<1x8xf32>
    %168 = vector.extract_strided_slice %134 {offsets = [0, 0], sizes = [1, 8], strides = [1, 1]} : vector<1x128xf32> to vector<1x8xf32>
    %169 = vector.extract_strided_slice %134 {offsets = [0, 8], sizes = [1, 8], strides = [1, 1]} : vector<1x128xf32> to vector<1x8xf32>
    %170 = arith.addf %168, %169 : vector<1x8xf32>
    %171 = vector.extract_strided_slice %134 {offsets = [0, 16], sizes = [1, 8], strides = [1, 1]} : vector<1x128xf32> to vector<1x8xf32>
    %172 = arith.addf %170, %171 : vector<1x8xf32>
    %173 = vector.extract_strided_slice %134 {offsets = [0, 24], sizes = [1, 8], strides = [1, 1]} : vector<1x128xf32> to vector<1x8xf32>
    %174 = arith.addf %172, %173 : vector<1x8xf32>
    %175 = vector.extract_strided_slice %134 {offsets = [0, 32], sizes = [1, 8], strides = [1, 1]} : vector<1x128xf32> to vector<1x8xf32>
    %176 = arith.addf %174, %175 : vector<1x8xf32>
    %177 = vector.extract_strided_slice %134 {offsets = [0, 40], sizes = [1, 8], strides = [1, 1]} : vector<1x128xf32> to vector<1x8xf32>
    %178 = arith.addf %176, %177 : vector<1x8xf32>
    %179 = vector.extract_strided_slice %134 {offsets = [0, 48], sizes = [1, 8], strides = [1, 1]} : vector<1x128xf32> to vector<1x8xf32>
    %180 = arith.addf %178, %179 : vector<1x8xf32>
    %181 = vector.extract_strided_slice %134 {offsets = [0, 56], sizes = [1, 8], strides = [1, 1]} : vector<1x128xf32> to vector<1x8xf32>
    %182 = arith.addf %180, %181 : vector<1x8xf32>
    %183 = vector.extract_strided_slice %134 {offsets = [0, 64], sizes = [1, 8], strides = [1, 1]} : vector<1x128xf32> to vector<1x8xf32>
    %184 = arith.addf %182, %183 : vector<1x8xf32>
    %185 = vector.extract_strided_slice %134 {offsets = [0, 72], sizes = [1, 8], strides = [1, 1]} : vector<1x128xf32> to vector<1x8xf32>
    %186 = arith.addf %184, %185 : vector<1x8xf32>
    %187 = vector.extract_strided_slice %134 {offsets = [0, 80], sizes = [1, 8], strides = [1, 1]} : vector<1x128xf32> to vector<1x8xf32>
    %188 = arith.addf %186, %187 : vector<1x8xf32>
    %189 = vector.extract_strided_slice %134 {offsets = [0, 88], sizes = [1, 8], strides = [1, 1]} : vector<1x128xf32> to vector<1x8xf32>
    %190 = arith.addf %188, %189 : vector<1x8xf32>
    %191 = vector.extract_strided_slice %134 {offsets = [0, 96], sizes = [1, 8], strides = [1, 1]} : vector<1x128xf32> to vector<1x8xf32>
    %192 = arith.addf %190, %191 : vector<1x8xf32>
    %193 = vector.extract_strided_slice %134 {offsets = [0, 104], sizes = [1, 8], strides = [1, 1]} : vector<1x128xf32> to vector<1x8xf32>
    %194 = arith.addf %192, %193 : vector<1x8xf32>
    %195 = vector.extract_strided_slice %134 {offsets = [0, 112], sizes = [1, 8], strides = [1, 1]} : vector<1x128xf32> to vector<1x8xf32>
    %196 = arith.addf %194, %195 : vector<1x8xf32>
    %197 = vector.extract_strided_slice %134 {offsets = [0, 120], sizes = [1, 8], strides = [1, 1]} : vector<1x128xf32> to vector<1x8xf32>
    %198 = arith.addf %196, %197 : vector<1x8xf32>
    %cst_66 = arith.constant 0.001953125 : f32
    %199 = vector.broadcast %cst_66 : f32 to vector<1x8xf32>
    %200 = arith.mulf %198, %199 : vector<1x8xf32>
    %201 = arith.mulf %167, %167 : vector<1x8xf32>
    %202 = arith.subf %200, %201 : vector<1x8xf32>
    %c0_67 = arith.constant 0 : index
    %c0_68 = arith.constant 0 : index
    %203 = vector.load %arg5[%c0_67, %c0_68] : memref<1x8xf32, #tpu.memory_space<vmem>>, vector<1x8xf32>
    %cst_69 = arith.constant 9.99999974E-6 : f32
    %204 = vector.broadcast %cst_69 : f32 to vector<1x8xf32>
    %205 = arith.addf %202, %204 : vector<1x8xf32>
    %206 = math.rsqrt %205 : vector<1x8xf32>
    %207 = arith.mulf %203, %206 : vector<1x8xf32>
    %c0_70 = arith.constant 0 : index
    %c0_71 = arith.constant 0 : index
    %208 = vector.load %arg6[%c0_70, %c0_71] : memref<1x8xf32, #tpu.memory_space<vmem>>, vector<1x8xf32>
    %209 = arith.mulf %167, %207 : vector<1x8xf32>
    %210 = arith.subf %208, %209 : vector<1x8xf32>
    %211 = tpu.concatenate %207, %207, %207, %207, %207, %207, %207, %207, %207, %207, %207, %207, %207, %207, %207, %207 in 1 : vector<1x8xf32>, vector<1x8xf32>, vector<1x8xf32>, vector<1x8xf32>, vector<1x8xf32>, vector<1x8xf32>, vector<1x8xf32>, vector<1x8xf32>, vector<1x8xf32>, vector<1x8xf32>, vector<1x8xf32>, vector<1x8xf32>, vector<1x8xf32>, vector<1x8xf32>, vector<1x8xf32>, vector<1x8xf32> -> vector<1x128xf32>
    %212 = tpu.concatenate %210, %210, %210, %210, %210, %210, %210, %210, %210, %210, %210, %210, %210, %210, %210, %210 in 1 : vector<1x8xf32>, vector<1x8xf32>, vector<1x8xf32>, vector<1x8xf32>, vector<1x8xf32>, vector<1x8xf32>, vector<1x8xf32>, vector<1x8xf32>, vector<1x8xf32>, vector<1x8xf32>, vector<1x8xf32>, vector<1x8xf32>, vector<1x8xf32>, vector<1x8xf32>, vector<1x8xf32>, vector<1x8xf32> -> vector<1x128xf32>
    %213 = vector.broadcast %211 : vector<1x128xf32> to vector<32x128xf32>
    %214 = arith.mulf %129, %213 : vector<32x128xf32>
    %215 = vector.broadcast %212 : vector<1x128xf32> to vector<32x128xf32>
    %216 = arith.addf %214, %215 : vector<32x128xf32>
    %217 = vector.shape_cast %216 : vector<32x128xf32> to vector<2x16x128xf32>
    %c0_72 = arith.constant 0 : index
    %c0_73 = arith.constant 0 : index
    %c0_74 = arith.constant 0 : index
    %218 = vector.load %arg0[%c0_72, %c0_73, %c0_74] : memref<2x16x128xf32, #tpu.memory_space<vmem>>, vector<2x16x128xf32>
    %219 = arith.addf %217, %218 : vector<2x16x128xf32>
    %cst_75 = arith.constant 0.000000e+00 : f32
    %220 = vector.broadcast %cst_75 : f32 to vector<2x16x128xf32>
    %221 = arith.maximumf %219, %220 : vector<2x16x128xf32>
    %c0_76 = arith.constant 0 : index
    %c0_77 = arith.constant 0 : index
    %c0_78 = arith.constant 0 : index
    %222 = vector.load %arg7[%c0_76, %c0_77, %c0_78] : memref<2x16x128xf32, #tpu.memory_space<vmem>>, vector<2x16x128xf32>
    tpu.vector_store %arg7[%c0_76, %c0_77, %c0_78], %221 {strides = array<i32>} : memref<2x16x128xf32, #tpu.memory_space<vmem>>, vector<2x16x128xf32>,
    return
  }
}

</mosaic_0001>

<bundles_post_ra>
// kernel: tpu_custom_call.1
= control target key start
LH: loop header
LB: loop body
LE: loop exit
PB: predicated region body
PF: predicated region fallthrough
CT: control target
= control target key end

     0   :  { %12 = vsyncpa [#allocation4], 0  ;;  %s1657_s0 = inlined_call_operand.hbm [shape: f32[2,16,128], index: 0, kind: input, shape index: {}]   ;;  %s1658_s1 = inlined_call_operand.hbm [shape: f32[3,128,128], index: 1, kind: input, shape index: {}]   ;;  %s1659_s2 = inlined_call_operand.vmem [shape: f32[1,8], index: 2, kind: input, shape index: {}]   ;;  %s1660_s3 = inlined_call_operand.vmem [shape: f32[1,8], index: 3, kind: input, shape index: {}]   ;;  %s1661_s4 = inlined_call_operand.hbm [shape: f32[3,128,128], index: 4, kind: input, shape index: {}]   ;;  %s1662_s5 = inlined_call_operand.vmem [shape: f32[1,8], index: 5, kind: input, shape index: {}]   ;;  %s1663_s6 = inlined_call_operand.vmem [shape: f32[1,8], index: 6, kind: input, shape index: {}]   ;;  %s1664_s7 = inlined_call_operand.hbm [shape: f32[2,16,128], index: 7, kind: output, shape index: {}]  }
   0x1   :  { %13 = vsyncpa [#allocation7], 0 }
   0x2   :  { %14 = vsyncpa [#allocation5], 0  ;;  %s32_s26 = sshll.u32 %s1658_s1, 4  ;;  %s1206_s27 = smov [#allocation6]   ;;  %s33_s26 = int_to_ptr.hbm [resolvable:$true] %s32_s26 }
   0x3   :  { %s34_s28 = sshll.u32 %s1206_s27, 4  ;;  %s19_s8 = sshll.u32 %s1657_s0, 4  ;;  %s35_s28 = int_to_ptr.vmem [resolvable:$true] %s34_s28  ;;  %s20_s8 = int_to_ptr.hbm [resolvable:$true] %s19_s8 }
   0x4   :  { %s1207_s9 = smov 128   ;;  %s1208_s10 = smov 8  }
   0x5   :  { %40 = dma.hbm_to_vmem [thread:$0]  %s33_s26, 6144, %s35_s28, [#allocation7], %s1207_s9, %s1207_s9, %s1208_s10  }
   0x6   :  { %s1209_s11 = smov [#allocation3]   ;;  %s49_s1 = sshll.u32 %s1661_s4, 4  ;;  %s50_s1 = int_to_ptr.hbm [resolvable:$true] %s49_s1 }
   0x7   :  { %s21_s12 = sshll.u32 %s1209_s11, 4  ;;  %s1210_s0 = smov [#allocation8]   ;;  %s22_s12 = int_to_ptr.vmem [resolvable:$true] %s21_s12 }
   0x8   :  { %27 = dma.hbm_to_vmem [thread:$0]  %s20_s8, 512, %s22_s12, [#allocation4], %s1207_s9, %s1207_s9, %s1208_s10  }
   0x9   :  { %s51_s15 = sshll.u32 %s1210_s0, 4  ;;  %s52_s15 = int_to_ptr.vmem [resolvable:$true] %s51_s15 }
   0xa   :  { %57 = dma.hbm_to_vmem [thread:$0]  %s50_s1, 6144, %s52_s15, [#allocation7], %s1207_s9, %s1207_s9, %s1208_s10  }
   0xb   :  { %1200 = dma.done.wait [#allocation4], 512  }
   0xc   :  { %1201 = vsyncadd [#allocation4], 4294966784 }
   0xd   :  { %1202 = dma.done.wait [#allocation7], 12288  }
   0xe   :  { %1203 = vsyncadd [#allocation7], 4294955008  ;;  %v1211_v0 = vmov 0.0   ;;  %v205_v1 = vld [vmem:[#allocation6 + $0x178] sm:$0xff]  ;;  %v204_v2 = vld [vmem:[#allocation6 + $0x170] sm:$0xff]  ;;  %s1212_s4 = smov 96  }
   0xf   :  { %74 = vst [vmem:[#allocation2] sm:$0x1] %v1211_v0  ;;  %v126_v3 = vld [vmem:[#allocation6 + $0xf8] sm:$0xff]  ;;  %206 = vmatpush.msra.mxu2 %v205_v1  ;;  %v125_v5 = vld [vmem:[#allocation6 + $0xf0] sm:$0xff]  ;;  %v203_v6 = vld [vmem:[#allocation6 + $0x168] sm:$0xff]  ;;  %s1213_s16 = smov 104  }
  0x10   :  { %75 = vst [vmem:[#allocation2 + $0x18] sm:$0x1] %v1211_v0  ;;  %127 = vmatpush.msra.mxu0 %v126_v3  ;;  %v105_v4 = vld [vmem:[#allocation6 + $0x78] sm:$0xff]  ;;  %v104_v7 = vld [vmem:[#allocation6 + $0x70] sm:$0xff]  ;;  %v124_v8 = vld [vmem:[#allocation6 + $0xe8] sm:$0xff]  ;;  %s1214_s17 = smov 120  }
  0x11   :  { %76 = vst [vmem:[#allocation2 + $0x11] sm:$0x1] %v1211_v0  ;;  %156 = vmatpush.msra.mxu1 %v105_v4  ;;  %207 = vmatpush.msra.mxu2 %v204_v2  ;;  %v103_v9 = vld [vmem:[#allocation6 + $0x68] sm:$0xff]  ;;  %v202_v10 = vld [vmem:[#allocation6 + $0x160] sm:$0xff]  ;;  %v201_v13 = vld [vmem:[#allocation6 + $0x158] sm:$0xff]  ;;  %s1215_s18 = smov 72  }
  0x12   :  { %77 = vst [vmem:[#allocation2 + $0x29] sm:$0x1] %v1211_v0  ;;  %128 = vmatpush.msra.mxu0 %v125_v5  ;;  %v123_v11 = vld [vmem:[#allocation6 + $0xe0] sm:$0xff]  ;;  %v122_v14 = vld [vmem:[#allocation6 + $0xd8] sm:$0xff]  ;;  %v200_v16 = vld [vmem:[#allocation6 + $0x150] sm:$0xff]  ;;  %s1216_s19 = smov 88  }
  0x13   :  { %157 = vmatpush.msra.mxu1 %v104_v7  ;;  %208 = vmatpush.msra.mxu2 %v203_v6  ;;  %v102_v12 = vld [vmem:[#allocation6 + $0x60] sm:$0xff]  ;;  %v101_v15 = vld [vmem:[#allocation6 + $0x58] sm:$0xff]  ;;  %v121_v17 = vld [vmem:[#allocation6 + $0xd0] sm:$0xff]  ;;  %s1217_s20 = smov 112   ;;  %s1218_s21 = smov 48   ;;  %vm450_vm3 = vcmask 64512  }
  0x14   :  { %129 = vmatpush.msra.mxu0 %v124_v8  ;;  %v100_v18 = vld [vmem:[#allocation6 + $0x50] sm:$0xff]  ;;  %v199_v19 = vld [vmem:[#allocation6 + $0x148] sm:$0xff]  ;;  %v198_v22 = vld [vmem:[#allocation6 + $0x140] sm:$0xff]  ;;  %s1219_s22 = smov 64   ;;  %s1220_s23 = smov 80   ;;  %vm452_vm4 = vcmask 130048  }
  0x15   :  { %158 = vmatpush.msra.mxu1 %v103_v9  ;;  %209 = vmatpush.msra.mxu2 %v202_v10  ;;  %v120_v20 = vld [vmem:[#allocation6 + $0xc8] sm:$0xff]  ;;  %v119_v23 = vld [vmem:[#allocation6 + $0xc0] sm:$0xff]  ;;  %v197_v25 = vld [vmem:[#allocation6 + $0x138] sm:$0xff]  ;;  %s1221_s24 = smov 24   ;;  %s1222_s25 = smov 40   ;;  %vm454_vm5 = vcmask 195584  }
  0x16   :  { %130 = vmatpush.msra.mxu0 %v123_v11  ;;  %v99_v21 = vld [vmem:[#allocation6 + $0x48] sm:$0xff]  ;;  %v98_v24 = vld [vmem:[#allocation6 + $0x40] sm:$0xff]  ;;  %v118_v26 = vld [vmem:[#allocation6 + $0xb8] sm:$0xff]  ;;  %s1223_s26 = smov 56   ;;  %s1224_s27 = smov 16   ;;  %vm456_vm6 = vcmask 261120  }
  0x17   :  { %159 = vmatpush.msra.mxu1 %v102_v12  ;;  %210 = vmatpush.msra.mxu2 %v201_v13  ;;  %v78_v27 = vld [vmem:[#allocation3] sm:$0xff]  ;;  %v97_v28 = vld [vmem:[#allocation6 + $0x38] sm:$0xff]  ;;  %v79_v29 = vld [vmem:[#allocation3 + $0x8] sm:$0xff]  ;;  %s1225_s28 = smov 32   ;;  %vm458_vm7 = vcmask 326656   ;;  %vm460_vm8 = vcmask 392192  }
  0x18   :  { %131 = vmatpush.msra.mxu0 %v122_v14  ;;  %82 = vst [vmem:[#allocation2 + $0x1] sm:$0xff] %v78_v27  ;;  %v196_v30 = vld [vmem:[#allocation6 + $0x130] sm:$0xff]  ;;  %v81_v34 = vld [vmem:[#allocation3 + $0x18] sm:$0xff]  ;;  %v195_v35 = vld [vmem:[#allocation6 + $0x128] sm:$0xff]  ;;  %vm462_vm9 = vcmask 457728   ;;  %vm464_vm10 = vcmask 523264  }
  0x19   :  { %160 = vmatpush.msra.mxu1 %v101_v15  ;;  %211 = vmatpush.msra.mxu2 %v200_v16  ;;  %v117_v31 = vld [vmem:[#allocation6 + $0xb0] sm:$0xff]  ;;  %83 = vst [vmem:[#allocation2 + $0x9] sm:$0xff] %v79_v29  ;;  %v116_v36 = vld [vmem:[#allocation6 + $0xa8] sm:$0xff]  ;;  %v194_v38 = vld [vmem:[#allocation6 + $0x120] sm:$0xff]  ;;  %vm466_vm11 = vcmask 588800   ;;  %vm468_vm12 = vcmask 654336  }
  0x1a   :  { %132 = vmatpush.msra.mxu0 %v121_v17  ;;  %v80_v32 = vld [vmem:[#allocation3 + $0x10] sm:$0xff]  ;;  %85 = vst [vmem:[#allocation2 + $0x21] sm:$0xff] %v81_v34  ;;  %v95_v37 = vld [vmem:[#allocation6 + $0x28] sm:$0xff]  ;;  %v115_v39 = vld [vmem:[#allocation6 + $0xa0] sm:$0xff]  ;;  %vm470_vm13 = vcmask 719872   ;;  %vm472_vm14 = vcmask 785408  }
  0x1b   :  { %161 = vmatpush.msra.mxu1 %v100_v18  ;;  %212 = vmatpush.msra.mxu2 %v199_v19  ;;  %v96_v33 = vld [vmem:[#allocation6 + $0x30] sm:$0xff]  ;;  %84 = vst [vmem:[#allocation2 + $0x19] sm:$0xff] %v80_v32  ;;  %v94_v40 = vld [vmem:[#allocation6 + $0x20] sm:$0xff]  ;;  %v193_v41 = vld [vmem:[#allocation6 + $0x118] sm:$0xff]  ;;  %vm474_vm15 = vcmask 850944   ;;  %s1033_s0 = sshll.u32 %s1664_s7, 4  ;;  %s1034_s0 = int_to_ptr.hbm [resolvable:$true] %s1033_s0 }
  0x1c   :  { %133 = vmatpush.msra.mxu0 %v120_v20  ;;  %v114_v42 = vld [vmem:[#allocation6 + $0x98] sm:$0xff]  ;;  %v192_v44 = vld [vmem:[#allocation6 + $0x110] sm:$0xff]  ;;  %v191_v47 = vld [vmem:[#allocation6 + $0x108] sm:$0xff] }
  0x1d   :  { %162 = vmatpush.msra.mxu1 %v99_v21  ;;  %213 = vmatpush.msra.mxu2 %v198_v22  ;;  %v93_v43 = vld [vmem:[#allocation6 + $0x18] sm:$0xff]  ;;  %v113_v45 = vld [vmem:[#allocation6 + $0x90] sm:$0xff]  ;;  %v112_v48 = vld [vmem:[#allocation6 + $0x88] sm:$0xff] }
  0x1e   :  { %134 = vmatpush.msra.mxu0 %v119_v23  ;;  %v92_v46 = vld [vmem:[#allocation6 + $0x10] sm:$0xff]  ;;  %v91_v49 = vld [vmem:[#allocation6 + $0x8] sm:$0xff]  ;;  %v190_v50 = vld [vmem:[#allocation6 + $0x100] sm:$0xff] }
  0x1f   :  { %163 = vmatpush.msra.mxu1 %v98_v24  ;;  %214 = vmatpush.msra.mxu2 %v197_v25  ;;  %v111_v51 = vld [vmem:[#allocation6 + $0x80] sm:$0xff]  ;;  %v86_v54 = vld [vmem:[#allocation2] sm:$0xff] }
  0x20   :  { %135 = vmatpush.msra.mxu0 %v118_v26  ;;  %v185_v52 = vld [vmem:[#allocation2 + $0x2] sm:$0xff]  ;;  %v90_v53 = vld [vmem:[#allocation6] sm:$0xff] }
  0x21   :  { %164 = vmatpush.msra.mxu1 %v97_v28  ;;  %215 = vmatpush.msra.mxu2 %v196_v30  ;;  %v186_v55 = vld [vmem:[#allocation2 + $0xa] sm:$0xff]  ;;  %v188_v59 = vld [vmem:[#allocation2 + $0x22] sm:$0xff] }
  0x22   :  { %136 = vmatpush.msra.mxu0 %v117_v31  ;;  %v87_v56 = vld [vmem:[#allocation2 + $0x8] sm:$0xff]  ;;  %v187_v57 = vld [vmem:[#allocation2 + $0x1a] sm:$0xff] }
  0x23   :  { %165 = vmatpush.msra.mxu1 %v96_v33  ;;  %216 = vmatpush.msra.mxu2 %v195_v35  ;;  %v88_v58 = vld [vmem:[#allocation2 + $0x18] sm:$0xff]  ;;  %v89_v60 = vld [vmem:[#allocation2 + $0x20] sm:$0xff] }
  0x24   :  { %137 = vmatpush.msra.mxu0 %v116_v36 }
  0x25   :  { %166 = vmatpush.msra.mxu1 %v95_v37  ;;  %217 = vmatpush.msra.mxu2 %v194_v38 }
  0x26   :  { %138 = vmatpush.msra.mxu0 %v115_v39 }
  0x27   :  { %167 = vmatpush.msra.mxu1 %v94_v40  ;;  %218 = vmatpush.msra.mxu2 %v193_v41 }
  0x28   :  { %139 = vmatpush.msra.mxu0 %v114_v42 }
  0x29   :  { %168 = vmatpush.msra.mxu1 %v93_v43  ;;  %219 = vmatpush.msra.mxu2 %v192_v44 }
  0x2a   :  { %140 = vmatpush.msra.mxu0 %v113_v45 }
  0x2b   :  { %169 = vmatpush.msra.mxu1 %v92_v46  ;;  %220 = vmatpush.msra.mxu2 %v191_v47 }
  0x2c   :  { %141 = vmatpush.msra.mxu0 %v112_v48 }
  0x2d   :  { %170 = vmatpush.msra.mxu1 %v91_v49  ;;  %221 = vmatpush.msra.mxu2 %v190_v50 }
  0x2e   :  { %142 = vmatpush.msra.mxu0 %v111_v51  ;;  %222 = vmatmul.f32.vlgmr.msra.gmra.mxu2 %v185_v52 }
  0x2f   :  { %171 = vmatpush.msra.mxu1 %v90_v53  ;;  %143 = vmatmul.f32.vlgmr.msra.gmra.mxu0 %v78_v27 }
  0x30   :  { %172 = vmatmul.f32.vlgmr.msra.gmra.mxu1 %v86_v54 }
  0x36   :  { %225 = vmatmul.f32.gmra.mxu2 %v186_v55 }
  0x37   :  { %146 = vmatmul.f32.gmra.mxu0 %v79_v29 }
  0x38   :  { %175 = vmatmul.f32.gmra.mxu1 %v87_v56 }
  0x3e   :  { %228 = vmatmul.f32.gmra.mxu2 %v187_v57 }
  0x3f   :  { %149 = vmatmul.f32.gmra.mxu0 %v80_v32 }
  0x40   :  { %178 = vmatmul.f32.gmra.mxu1 %v88_v58 }
  0x46   :  { %231 = vmatmul.f32.gmra.mxu2 %v188_v59 }
  0x47   :  { %152 = vmatmul.f32.gmra.mxu0 %v81_v34 }
  0x48   :  { %181 = vmatmul.f32.gmra.mxu1 %v89_v60 }
  0xac   :  { %v144_v61 = vpop.f32.mrf.mxu0 }
  0xad   :  { %v173_v62 = vpop.f32.mrf.mxu1 }
  0xae   :  { %v174_v7 = vadd.f32 %v173_v62, %v144_v61 }
  0xb1   :  { %v223_v63 = vpop.f32.mrf.mxu2 }
  0xb2   :  { %v1287_v12 = vadd.f32 %v223_v63, %v174_v7 }
  0xb4   :  { %v147_v0 = vpop.f32.mrf.mxu0  ;;  %v248_v27 = vmul.f32 %v1287_v12, %v1287_v12 }
  0xb5   :  { %v176_v1 = vpop.f32.mrf.mxu1 }
  0xb6   :  { %v177_v5 = vadd.f32 %v176_v1, %v147_v0 }
  0xb9   :  { %v226_v2 = vpop.f32.mrf.mxu2 }
  0xba   :  { %v1285_v9 = vadd.f32 %v226_v2, %v177_v5 }
  0xbc   :  { %v150_v3 = vpop.f32.mrf.mxu0  ;;  %v239_v15 = vadd.f32 %v1285_v9, %v1287_v12  ;;  %v249_v25 = vmul.f32 %v1285_v9, %v1285_v9 }
  0xbd   :  { %v179_v4 = vpop.f32.mrf.mxu1 }
  0xbe   :  { %v180_v8 = vadd.f32 %v179_v4, %v150_v3  ;;  %v252_v29 = vadd.f32 %v249_v25, %v248_v27 }
  0xc1   :  { %v229_v6 = vpop.f32.mrf.mxu2 }
  0xc2   :  { %v1289_v13 = vadd.f32 %v229_v6, %v180_v8 }
  0xc4   :  { %v153_v10 = vpop.f32.mrf.mxu0  ;;  %v240_v17 = vadd.f32 %v239_v15, %v1289_v13  ;;  %v250_v28 = vmul.f32 %v1289_v13, %v1289_v13 }
  0xc5   :  { %v182_v11 = vpop.f32.mrf.mxu1 }
  0xc6   :  { %v183_v14 = vadd.f32 %v182_v11, %v153_v10  ;;  %v253_v31 = vadd.f32 %v252_v29, %v250_v28 }
  0xc9   :  { %v232_v16 = vpop.f32.mrf.mxu2 }
  0xca   :  { %v1294_v18 = vadd.f32 %v232_v16, %v183_v14 }
  0xcc   :  { %v241_v19 = vadd.f32 %v240_v17, %v1294_v18  ;;  %v251_v30 = vmul.f32 %v1294_v18, %v1294_v18 }
  0xce   :  { %v242_v20 = vrot.slane %v241_v19, 4  ;;  %v254_v32 = vadd.f32 %v253_v31, %v251_v30 }
  0xd0   :  { %v243_v21 = vadd.f32 %v242_v20, %v241_v19  ;;  %v255_v33 = vrot.slane %v254_v32, 4 }
  0xd2   :  { %v244_v22 = vrot.slane %v243_v21, 2  ;;  %v256_v34 = vadd.f32 %v255_v33, %v254_v32 }
  0xd4   :  { %v245_v23 = vadd.f32 %v244_v22, %v243_v21  ;;  %v257_v35 = vrot.slane %v256_v34, 2 }
  0xd6   :  { %v246_v24 = vrot.slane %v245_v23, 1  ;;  %v258_v36 = vadd.f32 %v257_v35, %v256_v34 }
  0xd8   :  { %v1299_v26 = vadd.f32 %v246_v24, %v245_v23  ;;  %v259_v37 = vrot.slane %v258_v36, 1 }
  0xda   :  { %274 = vrot.lane.b32.xlu2 %v1299_v26, %s1212_s4  ;;  %270 = vrot.lane.b32.xlu1 %v1299_v26, %s1213_s16  ;;  %v260_v38 = vadd.f32 %v259_v37, %v258_v36 }
  0xdb   :  { %262 = vrot.lane.b32.xlu0 %v1299_v26, %s1214_s17 }
  0xe2   :  { %286 = vrot.lane.b32.xlu2 %v1299_v26, %s1215_s18  ;;  %278 = vrot.lane.b32.xlu1 %v1299_v26, %s1216_s19 }
  0xe3   :  { %266 = vrot.lane.b32.xlu0 %v1299_v26, %s1217_s20 }
  0xea   :  { %298 = vrot.lane.b32.xlu2 %v1299_v26, %s1218_s21  ;;  %290 = vrot.lane.b32.xlu1 %v1299_v26, %s1219_s22 }
  0xeb   :  { %282 = vrot.lane.b32.xlu0 %v1299_v26, %s1220_s23 }
  0xf2   :  { %310 = vrot.lane.b32.xlu2 %v1299_v26, %s1221_s24  ;;  %302 = vrot.lane.b32.xlu1 %v1299_v26, %s1222_s25 }
  0xf3   :  { %294 = vrot.lane.b32.xlu0 %v1299_v26, %s1223_s26 }
  0xfa   :  { %328 = vrot.lane.b32.xlu2 %v260_v38, %s1217_s20  ;;  %314 = vrot.lane.b32.xlu1 %v1299_v26, %s1224_s27 }
  0xfb   :  { %306 = vrot.lane.b32.xlu0 %v1299_v26, %s1225_s28 }
 0x102   :  { %336 = vrot.lane.b32.xlu2 %v260_v38, %s1212_s4  ;;  %324 = vrot.lane.b32.xlu1 %v260_v38, %s1214_s17 }
 0x103   :  { %332 = vrot.lane.b32.xlu0 %v260_v38, %s1213_s16 }
 0x10a   :  { %348 = vrot.lane.b32.xlu2 %v260_v38, %s1215_s18  ;;  %340 = vrot.lane.b32.xlu1 %v260_v38, %s1216_s19 }
 0x10b   :  { %344 = vrot.lane.b32.xlu0 %v260_v38, %s1220_s23 }
 0x112   :  { %360 = vrot.lane.b32.xlu2 %v260_v38, %s1218_s21  ;;  %352 = vrot.lane.b32.xlu1 %v260_v38, %s1219_s22 }
 0x113   :  { %356 = vrot.lane.b32.xlu0 %v260_v38, %s1223_s26 }
 0x11a   :  { %372 = vrot.lane.b32.xlu2 %v260_v38, %s1221_s24  ;;  %364 = vrot.lane.b32.xlu1 %v260_v38, %s1222_s25 }
 0x11b   :  { %368 = vrot.lane.b32.xlu0 %v260_v38, %s1225_s28 }
 0x122   :  { %380 = vrot.lane.b32.xlu2 %v260_v38, %s1208_s10  ;;  %376 = vrot.lane.b32.xlu1 %v260_v38, %s1224_s27 }
 0x123   :  { %318 = vrot.lane.b32.xlu0 %v1299_v26, %s1208_s10 }
 0x134   :  { %v275_v39 = vpop.permute.xlu2 %274 }
 0x13c   :  { %v287_v40 = vpop.permute.xlu2 %286 }
 0x144   :  { %v299_v43 = vpop.permute.xlu2 %298 }
 0x14c   :  { %v271_v41 = vpop.permute.xlu1 %270  ;;  %v311_v46 = vpop.permute.xlu2 %310 }
 0x14d   :  { %v263_v42 = vpop.permute.xlu0 %262 }
 0x14e   :  { %v265_v52 = vadd.f32 %v263_v42, %v1299_v26 }
 0x154   :  { %v279_v44 = vpop.permute.xlu1 %278  ;;  %v329_v49 = vpop.permute.xlu2 %328 }
 0x155   :  { %v267_v45 = vpop.permute.xlu0 %266 }
 0x156   :  { %v269_v53 = vadd.f32 %v267_v45, %v265_v52 }
 0x158   :  { %v273_v54 = vadd.f32 %v271_v41, %v269_v53 }
 0x15a   :  { %v277_v58 = vadd.f32 %v275_v39, %v273_v54 }
 0x15c   :  { %v291_v47 = vpop.permute.xlu1 %290  ;;  %v337_v57 = vpop.permute.xlu2 %336  ;;  %v281_v59 = vadd.f32 %v279_v44, %v277_v58 }
 0x15d   :  { %v283_v48 = vpop.permute.xlu0 %282 }
 0x15e   :  { %v285_v0 = vadd.f32 %v283_v48, %v281_v59 }
 0x160   :  { %v289_v4 = vadd.f32 %v287_v40, %v285_v0 }
 0x162   :  { %v293_v10 = vadd.f32 %v291_v47, %v289_v4  ;;  %v600_v4 = vld [vmem:[#allocation8 + $0xf8] sm:$0xff] }
 0x163   :  { %601 = vmatpush.msra.mxu3 %v600_v4  ;;  %v586_v4 = vld [vmem:[#allocation8 + $0x88] sm:$0xff] }
 0x164   :  { %v303_v50 = vpop.permute.xlu1 %302  ;;  %v349_v1 = vpop.permute.xlu2 %348 }
 0x165   :  { %v295_v51 = vpop.permute.xlu0 %294 }
 0x166   :  { %v297_v11 = vadd.f32 %v295_v51, %v293_v10 }
 0x168   :  { %v301_v20 = vadd.f32 %v299_v43, %v297_v11  ;;  %v597_v11 = vld [vmem:[#allocation8 + $0xe0] sm:$0xff] }
 0x16a   :  { %v305_v22 = vadd.f32 %v303_v50, %v301_v20  ;;  %v596_v20 = vld [vmem:[#allocation8 + $0xd8] sm:$0xff] }
 0x16c   :  { %v315_v55 = vpop.permute.xlu1 %314  ;;  %v361_v14 = vpop.permute.xlu2 %360 }
 0x16d   :  { %v307_v56 = vpop.permute.xlu0 %306 }
 0x16e   :  { %v309_v24 = vadd.f32 %v307_v56, %v305_v22  ;;  %v595_v22 = vld [vmem:[#allocation8 + $0xd0] sm:$0xff] }
 0x170   :  { %v313_v30 = vadd.f32 %v311_v46, %v309_v24  ;;  %v387_v46 = vld [vmem:[%s1659_s2] sm:$0x1]  ;;  %v594_v24 = vld [vmem:[#allocation8 + $0xc8] sm:$0xff] }
 0x172   :  { %v317_v33 = vadd.f32 %v315_v55, %v313_v30  ;;  %v400_v55 = vld [vmem:[%s1660_s3] sm:$0x1]  ;;  %v575_v30 = vld [vmem:[#allocation8 + $0x58] sm:$0xff] }
 0x174   :  { %v325_v60 = vpop.permute.xlu1 %324  ;;  %v373_v25 = vpop.permute.xlu2 %372 }
 0x175   :  { %v327_v61 = vadd.f32 %v325_v60, %v260_v38  ;;  %v333_v62 = vpop.permute.xlu0 %332 }
 0x177   :  { %v331_v63 = vadd.f32 %v329_v49, %v327_v61 }
 0x179   :  { %v335_v2 = vadd.f32 %v333_v62, %v331_v63 }
 0x17b   :  { %v339_v3 = vadd.f32 %v337_v57, %v335_v2 }
 0x17c   :  { %v341_v5 = vpop.permute.xlu1 %340  ;;  %v381_v36 = vpop.permute.xlu2 %380 }
 0x17d   :  { %v343_v6 = vadd.f32 %v341_v5, %v339_v3  ;;  %v345_v7 = vpop.permute.xlu0 %344  ;;  %v599_v5 = vld [vmem:[#allocation8 + $0xf0] sm:$0xff] }
 0x17e   :  { %602 = vmatpush.msra.mxu3 %v599_v5 }
 0x17f   :  { %v347_v8 = vadd.f32 %v345_v7, %v343_v6  ;;  %v598_v6 = vld [vmem:[#allocation8 + $0xe8] sm:$0xff] }
 0x180   :  { %603 = vmatpush.msra.mxu3 %v598_v6  ;;  %v568_v6 = vld [vmem:[#allocation8 + $0x20] sm:$0xff] }
 0x181   :  { %v351_v15 = vadd.f32 %v349_v1, %v347_v8 }
 0x182   :  { %604 = vmatpush.msra.mxu3 %v597_v11  ;;  %v1474_v11 = vld [vmem:[#allocation8 + $0x120] sm:$0xff] }
 0x184   :  { %v353_v16 = vpop.permute.xlu1 %352  ;;  %605 = vmatpush.msra.mxu3 %v596_v20  ;;  %v1478_v20 = vld [vmem:[#allocation8 + $0x118] sm:$0xff] }
 0x185   :  { %v355_v17 = vadd.f32 %v353_v16, %v351_v15  ;;  %v357_v19 = vpop.permute.xlu0 %356  ;;  %v1418_v15 = vld [vmem:[#allocation8 + $0x178] sm:$0xff]  ;;  %v578_v16 = vld [vmem:[#allocation8 + $0x70] sm:$0xff] }
 0x186   :  { %680 = vmatpush.msrb.mxu1 %v1418_v15  ;;  %606 = vmatpush.msra.mxu3 %v595_v22 }
 0x187   :  { %v359_v21 = vadd.f32 %v357_v19, %v355_v17  ;;  %v1420_v17 = vld [vmem:[#allocation8 + $0x170] sm:$0xff]  ;;  %v577_v19 = vld [vmem:[#allocation8 + $0x68] sm:$0xff] }
 0x188   :  { %681 = vmatpush.msrb.mxu1 %v1420_v17  ;;  %607 = vmatpush.msra.mxu3 %v594_v24 }
 0x189   :  { %v363_v23 = vadd.f32 %v361_v14, %v359_v21  ;;  %v579_v14 = vld [vmem:[#allocation8 + $0x78] sm:$0xff]  ;;  %v1423_v21 = vld [vmem:[#allocation8 + $0x168] sm:$0xff] }
 0x18a   :  { %630 = vmatpush.msrb.mxu0 %v579_v14  ;;  %1047 = vmatpush.msrb.mxu2 %v579_v14 }
 0x18b   :  { %682 = vmatpush.msrb.mxu1 %v1423_v21 }
 0x18c   :  { %v365_v26 = vpop.permute.xlu1 %364  ;;  %631 = vmatpush.msrb.mxu0 %v578_v16  ;;  %1048 = vmatpush.msrb.mxu2 %v578_v16  ;;  %v585_v16 = vld [vmem:[#allocation8 + $0x80] sm:$0xff] }
 0x18d   :  { %v367_v27 = vadd.f32 %v365_v26, %v363_v23  ;;  %v369_v28 = vpop.permute.xlu0 %368  ;;  %v576_v26 = vld [vmem:[#allocation8 + $0x60] sm:$0xff] }
 0x18e   :  { %632 = vmatpush.msrb.mxu0 %v577_v19  ;;  %1049 = vmatpush.msrb.mxu2 %v577_v19  ;;  %v567_v19 = vld [vmem:[#allocation8 + $0x18] sm:$0xff] }
 0x18f   :  { %v371_v29 = vadd.f32 %v369_v28, %v367_v27  ;;  %v1431_v27 = vld [vmem:[#allocation8 + $0x160] sm:$0xff] }
 0x190   :  { %633 = vmatpush.msrb.mxu0 %v576_v26  ;;  %1050 = vmatpush.msrb.mxu2 %v576_v26  ;;  %v1482_v26 = vld [vmem:[#allocation8 + $0x110] sm:$0xff] }
 0x191   :  { %v375_v31 = vadd.f32 %v373_v25, %v371_v29  ;;  %683 = vmatpush.msrb.mxu1 %v1431_v27 }
 0x192   :  { %634 = vmatpush.msrb.mxu0 %v575_v30  ;;  %1051 = vmatpush.msrb.mxu2 %v575_v30 }
 0x194   :  { %v377_v32 = vpop.permute.xlu1 %376 }
 0x195   :  { %v379_v34 = vadd.f32 %v377_v32, %v375_v31  ;;  %v319_v35 = vpop.permute.xlu0 %318  ;;  %v1436_v31 = vld [vmem:[#allocation8 + $0x158] sm:$0xff]  ;;  %v574_v32 = vld [vmem:[#allocation8 + $0x50] sm:$0xff] }
 0x196   :  { %v321_v37 = vadd.f32 %v319_v35, %v317_v33  ;;  %v1438_v33 = vld [vmem:[#allocation8 + $0x150] sm:$0xff]  ;;  %684 = vmatpush.msrb.mxu1 %v1436_v31  ;;  %v593_v35 = vld [vmem:[#allocation8 + $0xc0] sm:$0xff]  ;;  %635 = vmatpush.msrb.mxu0 %v574_v32 }
 0x197   :  { %v383_v38 = vadd.f32 %v381_v36, %v379_v34  ;;  %v573_v34 = vld [vmem:[#allocation8 + $0x48] sm:$0xff]  ;;  %1052 = vmatpush.msrb.mxu2 %v574_v32  ;;  %608 = vmatpush.msra.mxu3 %v593_v35  ;;  %v564_v35 = vld [vmem:[#allocation8] sm:$0xff] }
 0x198   :  { %v322_v39 = vmul.f32 0.001953125, %v321_v37  ;;  %v1442_v37 = vld [vmem:[#allocation8 + $0x148] sm:$0xff]  ;;  %685 = vmatpush.msrb.mxu1 %v1438_v33  ;;  %636 = vmatpush.msrb.mxu0 %v573_v34 }
 0x199   :  { %v384_v40 = vmul.f32 0.001953125, %v383_v38  ;;  %v592_v38 = vld [vmem:[#allocation8 + $0xb8] sm:$0xff]  ;;  %1053 = vmatpush.msrb.mxu2 %v573_v34  ;;  %v565_v32 = vld [vmem:[#allocation8 + $0x8] sm:$0xff] }
 0x19a   :  { %v385_v41 = vmul.f32 %v322_v39, %v322_v39  ;;  %686 = vmatpush.msrb.mxu1 %v1442_v37  ;;  %609 = vmatpush.msra.mxu3 %v592_v38  ;;  %v664_v38 = vld [vmem:[#allocation8 + $0x100] sm:$0xff] }
 0x19c   :  { %v386_v42 = vsub.f32 %v384_v40, %v385_v41 }
 0x19e   :  { %v388_v43 = vadd.f32 1e-05, %v386_v42  ;;  %v591_v42 = vld [vmem:[#allocation8 + $0xb0] sm:$0xff] }
 0x19f   :  { %610 = vmatpush.msra.mxu3 %v591_v42 }
 0x1a0   :  { %1100 = vrsqrt.f32 %v388_v43  ;;  %vm395_vm1 = vweird.f32 %v388_v43 }
 0x1a6   :  { %v1101_v44 = vpop.eup %1100 }
 0x1a7   :  { %v390_v45 = vmul.f32 %v1101_v44, %v388_v43  ;;  %vm396_vm0 = vweird.f32 %v1101_v44 }
 0x1a8   :  { %vm397_vm2 = vmor %vm395_vm1, %vm396_vm0  ;;  %vm1666_vm0 = vcmask 916480   ;;  %vm1665_vm1 = vcmask 982016  }
 0x1a9   :  { %v391_v47 = vmul.f32 %v1101_v44, %v390_v45  ;;  %v572_v45 = vld [vmem:[#allocation8 + $0x40] sm:$0xff] }
 0x1aa   :  { %637 = vmatpush.msrb.mxu0 %v572_v45  ;;  %1054 = vmatpush.msrb.mxu2 %v572_v45 }
 0x1ab   :  { %v392_v48 = vmul.f32 0.5, %v391_v47  ;;  %v1450_v47 = vld [vmem:[#allocation8 + $0x140] sm:$0xff] }
 0x1ac   :  { %687 = vmatpush.msrb.mxu1 %v1450_v47 }
 0x1ad   :  { %v393_v49 = vsub.f32 1.5, %v392_v48 }
 0x1af   :  { %v394_v50 = vmul.f32 %v1101_v44, %v393_v49 }
 0x1b1   :  { %v398_v51 = vsel %vm397_vm2, %v1101_v44, %v394_v50  ;;  %v590_v44 = vld [vmem:[#allocation8 + $0xa8] sm:$0xff] }
 0x1b2   :  { %v1356_v52 = vmul.f32 %v398_v51, %v387_v46  ;;  %v589_v46 = vld [vmem:[#allocation8 + $0xa0] sm:$0xff]  ;;  %v571_v51 = vld [vmem:[#allocation8 + $0x38] sm:$0xff]  ;;  %611 = vmatpush.msra.mxu3 %v590_v44 }
 0x1b3   :  { %638 = vmatpush.msrb.mxu0 %v571_v51  ;;  %1055 = vmatpush.msrb.mxu2 %v571_v51 }
 0x1b4   :  { %v404_v53 = vperm.slane %v1356_v52, 0  ;;  %v401_v54 = vmul.f32 %v1356_v52, %v322_v39  ;;  %612 = vmatpush.msra.mxu3 %v589_v46 }
 0x1b6   :  { %411 = vrot.lane.b32.xlu2 %v404_v53, %s1221_s24  ;;  %408 = vrot.lane.b32.xlu1 %v404_v53, %s1224_s27  ;;  %v1378_v56 = vsub.f32 %v400_v55, %v401_v54 }
 0x1b7   :  { %405 = vrot.lane.b32.xlu0 %v404_v53, %s1208_s10 }
 0x1b8   :  { %v481_v57 = vperm.slane %v1378_v56, 0 }
 0x1be   :  { %420 = vrot.lane.b32.xlu2 %v404_v53, %s1218_s21  ;;  %414 = vrot.lane.b32.xlu1 %v404_v53, %s1225_s28 }
 0x1bf   :  { %417 = vrot.lane.b32.xlu0 %v404_v53, %s1222_s25 }
 0x1c6   :  { %429 = vrot.lane.b32.xlu2 %v404_v53, %s1215_s18  ;;  %423 = vrot.lane.b32.xlu1 %v404_v53, %s1223_s26 }
 0x1c7   :  { %426 = vrot.lane.b32.xlu0 %v404_v53, %s1219_s22 }
 0x1ce   :  { %438 = vrot.lane.b32.xlu2 %v404_v53, %s1212_s4  ;;  %432 = vrot.lane.b32.xlu1 %v404_v53, %s1220_s23 }
 0x1cf   :  { %435 = vrot.lane.b32.xlu0 %v404_v53, %s1216_s19 }
 0x1d6   :  { %447 = vrot.lane.b32.xlu2 %v404_v53, %s1214_s17  ;;  %441 = vrot.lane.b32.xlu1 %v404_v53, %s1213_s16 }
 0x1d7   :  { %444 = vrot.lane.b32.xlu0 %v404_v53, %s1217_s20  ;;  %v588_v53 = vld [vmem:[#allocation8 + $0x98] sm:$0xff] }
 0x1d8   :  { %613 = vmatpush.msra.mxu3 %v588_v53 }
 0x1de   :  { %488 = vrot.lane.b32.xlu1 %v481_v57, %s1221_s24  ;;  %485 = vrot.lane.b32.xlu2 %v481_v57, %s1224_s27 }
 0x1df   :  { %482 = vrot.lane.b32.xlu0 %v481_v57, %s1208_s10 }
 0x1e6   :  { %497 = vrot.lane.b32.xlu1 %v481_v57, %s1218_s21  ;;  %494 = vrot.lane.b32.xlu2 %v481_v57, %s1222_s25 }
 0x1e7   :  { %491 = vrot.lane.b32.xlu0 %v481_v57, %s1225_s28 }
 0x1ee   :  { %506 = vrot.lane.b32.xlu1 %v481_v57, %s1215_s18  ;;  %503 = vrot.lane.b32.xlu2 %v481_v57, %s1219_s22 }
 0x1ef   :  { %500 = vrot.lane.b32.xlu0 %v481_v57, %s1223_s26 }
 0x1f6   :  { %515 = vrot.lane.b32.xlu1 %v481_v57, %s1212_s4  ;;  %512 = vrot.lane.b32.xlu2 %v481_v57, %s1216_s19 }
 0x1f7   :  { %509 = vrot.lane.b32.xlu0 %v481_v57, %s1220_s23 }
 0x1fe   :  { %521 = vrot.lane.b32.xlu1 %v481_v57, %s1217_s20  ;;  %524 = vrot.lane.b32.xlu2 %v481_v57, %s1214_s17 }
 0x1ff   :  { %518 = vrot.lane.b32.xlu0 %v481_v57, %s1213_s16  ;;  %v570_v57 = vld [vmem:[#allocation8 + $0x30] sm:$0xff] }
 0x200   :  { %639 = vmatpush.msrb.mxu0 %v570_v57  ;;  %1056 = vmatpush.msrb.mxu2 %v570_v57 }
 0x210   :  { %v1396_v58 = vpop.permute.xlu2 %411 }
 0x218   :  { %v1398_v59 = vpop.permute.xlu2 %420 }
 0x220   :  { %v1400_v62 = vpop.permute.xlu2 %429 }
 0x228   :  { %v409_v60 = vpop.permute.xlu1 %408  ;;  %v1406_v1 = vpop.permute.xlu2 %438 }
 0x229   :  { %v406_v61 = vpop.permute.xlu0 %405 }
 0x22a   :  { %v451_v28 = vsel %vm450_vm3, %v1356_v52, %v406_v61  ;;  %v1457_v52 = vld [vmem:[#allocation8 + $0x138] sm:$0xff] }
 0x22b   :  { %v453_v36 = vsel %vm452_vm4, %v451_v28, %v409_v60  ;;  %688 = vmatpush.msrb.mxu1 %v1457_v52 }
 0x22c   :  { %v455_v40 = vsel %vm454_vm5, %v453_v36, %v1396_v58  ;;  %v1462_v58 = vld [vmem:[#allocation8 + $0x130] sm:$0xff] }
 0x22d   :  { %689 = vmatpush.msrb.mxu1 %v1462_v58 }
 0x230   :  { %v1402_v63 = vpop.permute.xlu1 %414  ;;  %v1414_v8 = vpop.permute.xlu2 %447 }
 0x231   :  { %v1404_v0 = vpop.permute.xlu0 %417  ;;  %v457_v43 = vsel %vm456_vm6, %v455_v40, %v1402_v63  ;;  %v587_v63 = vld [vmem:[#allocation8 + $0x90] sm:$0xff] }
 0x232   :  { %v459_v48 = vsel %vm458_vm7, %v457_v43, %v1404_v0  ;;  %v1468_v0 = vld [vmem:[#allocation8 + $0x128] sm:$0xff]  ;;  %614 = vmatpush.msra.mxu3 %v587_v63 }
 0x233   :  { %v461_v54 = vsel %vm460_vm8, %v459_v48, %v1398_v59  ;;  %v569_v59 = vld [vmem:[#allocation8 + $0x28] sm:$0xff]  ;;  %690 = vmatpush.msrb.mxu1 %v1468_v0 }
 0x234   :  { %640 = vmatpush.msrb.mxu0 %v569_v59  ;;  %1057 = vmatpush.msrb.mxu2 %v569_v59 }
 0x235   :  { %691 = vmatpush.msrb.mxu1 %v1474_v11  ;;  %615 = vmatpush.msra.mxu3 %v586_v4 }
 0x236   :  { %641 = vmatpush.msrb.mxu0 %v568_v6  ;;  %1058 = vmatpush.msrb.mxu2 %v568_v6 }
 0x237   :  { %692 = vmatpush.msrb.mxu1 %v1478_v20  ;;  %616 = vmatpush.msra.mxu3 %v585_v16 }
 0x238   :  { %v1408_v2 = vpop.permute.xlu1 %423  ;;  %v486_v29 = vpop.permute.xlu2 %485  ;;  %642 = vmatpush.msrb.mxu0 %v567_v19  ;;  %1059 = vmatpush.msrb.mxu2 %v567_v19 }
 0x239   :  { %v1410_v3 = vpop.permute.xlu0 %426  ;;  %693 = vmatpush.msrb.mxu1 %v1482_v26  ;;  %1063 = vmatpush.msrb.mxu3 %v1418_v15 }
 0x23b   :  { %1064 = vmatpush.msrb.mxu3 %v1420_v17 }
 0x23d   :  { %1065 = vmatpush.msrb.mxu3 %v1423_v21 }
 0x23f   :  { %1066 = vmatpush.msrb.mxu3 %v1431_v27 }
 0x240   :  { %v1412_v7 = vpop.permute.xlu1 %432  ;;  %v495_v49 = vpop.permute.xlu2 %494 }
 0x241   :  { %v1416_v10 = vpop.permute.xlu0 %435  ;;  %1067 = vmatpush.msrb.mxu3 %v1436_v31 }
 0x243   :  { %1068 = vmatpush.msrb.mxu3 %v1438_v33 }
 0x245   :  { %1069 = vmatpush.msrb.mxu3 %v1442_v37 }
 0x247   :  { %1070 = vmatpush.msrb.mxu3 %v1450_v47 }
 0x248   :  { %v1426_v23 = vpop.permute.xlu1 %441  ;;  %v504_v24 = vpop.permute.xlu2 %503 }
 0x249   :  { %v1428_v25 = vpop.permute.xlu0 %444  ;;  %1071 = vmatpush.msrb.mxu3 %v1457_v52 }
 0x24b   :  { %1072 = vmatpush.msrb.mxu3 %v1462_v58 }
 0x24d   :  { %1073 = vmatpush.msrb.mxu3 %v1468_v0 }
 0x24f   :  { %1074 = vmatpush.msrb.mxu3 %v1474_v11 }
 0x250   :  { %v489_v39 = vpop.permute.xlu1 %488  ;;  %v513_v42 = vpop.permute.xlu2 %512 }
 0x251   :  { %v483_v41 = vpop.permute.xlu0 %482  ;;  %1075 = vmatpush.msrb.mxu3 %v1478_v20 }
 0x252   :  { %v527_v50 = vsel %vm450_vm3, %v1378_v56, %v483_v41  ;;  %v463_v56 = vsel %vm462_vm9, %v461_v54, %v1408_v2 }
 0x253   :  { %v528_v60 = vsel %vm452_vm4, %v527_v50, %v486_v29  ;;  %v465_v5 = vsel %vm464_vm10, %v463_v56, %v1410_v3  ;;  %v566_v3 = vld [vmem:[#allocation8 + $0x10] sm:$0xff]  ;;  %1076 = vmatpush.msrb.mxu3 %v1482_v26 }
 0x254   :  { %v529_v2 = vsel %vm454_vm5, %v528_v60, %v489_v39  ;;  %v467_v22 = vsel %vm466_vm11, %v465_v5, %v1400_v62  ;;  %643 = vmatpush.msrb.mxu0 %v566_v3  ;;  %1060 = vmatpush.msrb.mxu2 %v566_v3  ;;  %v1488_v62 = vld [vmem:[#allocation8 + $0x108] sm:$0xff] }
 0x255   :  { %v469_v28 = vsel %vm468_vm12, %v467_v22, %v1412_v7  ;;  %694 = vmatpush.msrb.mxu1 %v1488_v62  ;;  %1077 = vmatpush.msrb.mxu3 %v1488_v62 }
 0x256   :  { %v471_v7 = vsel %vm470_vm13, %v469_v28, %v1416_v10  ;;  %644 = vmatpush.msrb.mxu0 %v565_v32  ;;  %1061 = vmatpush.msrb.mxu2 %v565_v32 }
 0x257   :  { %v473_v15 = vsel %vm472_vm14, %v471_v7, %v1406_v1  ;;  %695 = vmatpush.msrb.mxu1 %v664_v38  ;;  %1078 = vmatpush.msrb.mxu3 %v664_v38 }
 0x258   :  { %v498_v55 = vpop.permute.xlu1 %497  ;;  %645 = vmatpush.msrb.mxu0 %v564_v35  ;;  %1062 = vmatpush.msrb.mxu2 %v564_v35  ;;  %v475_v10 = vsel %vm474_vm15, %v473_v15, %v1426_v23 }
 0x259   :  { %v492_v61 = vpop.permute.xlu0 %491  ;;  %v477_v17 = vsel %vm1666_vm0, %v475_v10, %v1428_v25 }
 0x25a   :  { %v530_v14 = vsel %vm456_vm6, %v529_v2, %v492_v61  ;;  %v479_v23 = vsel %vm1665_vm1, %v477_v17, %v1414_v8 }
 0x25b   :  { %v531_v29 = vsel %vm458_vm7, %v530_v14, %v495_v49  ;;  %v542_v27 = vperm.slane %v479_v23, 0  ;;  %v525_v49 = vpop.permute.xlu2 %524 }
 0x25c   :  { %v532_v36 = vsel %vm460_vm8, %v531_v29, %v498_v55 }
 0x25d   :  { %v543_v8 = vmul.f32 %v542_v27, %v1287_v12  ;;  %v544_v37 = vmul.f32 %v542_v27, %v1285_v9  ;;  %v545_v47 = vmul.f32 %v542_v27, %v1289_v13  ;;  %v546_v50 = vmul.f32 %v542_v27, %v1294_v18 }
 0x260   :  { %v507_v30 = vpop.permute.xlu1 %506 }
 0x261   :  { %v501_v34 = vpop.permute.xlu0 %500 }
 0x262   :  { %v533_v39 = vsel %vm462_vm9, %v532_v36, %v501_v34 }
 0x263   :  { %v534_v40 = vsel %vm464_vm10, %v533_v39, %v504_v24 }
 0x264   :  { %v535_v1 = vsel %vm466_vm11, %v534_v40, %v507_v30 }
 0x268   :  { %v516_v41 = vpop.permute.xlu1 %515 }
 0x269   :  { %v510_v43 = vpop.permute.xlu0 %509 }
 0x26a   :  { %v536_v21 = vsel %vm468_vm12, %v535_v1, %v510_v43 }
 0x26b   :  { %v537_v44 = vsel %vm470_vm13, %v536_v21, %v513_v42 }
 0x26c   :  { %v538_v25 = vsel %vm472_vm14, %v537_v44, %v516_v41 }
 0x270   :  { %v522_v45 = vpop.permute.xlu1 %521 }
 0x271   :  { %v519_v48 = vpop.permute.xlu0 %518 }
 0x272   :  { %v539_v31 = vsel %vm474_vm15, %v538_v25, %v519_v48 }
 0x273   :  { %v540_v33 = vsel %vm1666_vm0, %v539_v31, %v522_v45 }
 0x274   :  { %v541_v46 = vsel %vm1665_vm1, %v540_v33, %v525_v49 }
 0x275   :  { %v547_v51 = vperm.slane %v541_v46, 0 }
 0x277   :  { %v548_v53 = vadd.f32 %v547_v51, %v543_v8  ;;  %v549_v52 = vadd.f32 %v547_v51, %v544_v37  ;;  %v550_v54 = vadd.f32 %v547_v51, %v545_v47  ;;  %v551_v55 = vadd.f32 %v547_v51, %v546_v50 }
 0x279   :  { %v552_v12 = vmax.f32 %v548_v53, 0.0  ;;  %v553_v57 = vmax.f32 %v549_v52, 0.0  ;;  %v554_v56 = vmax.f32 %v550_v54, 0.0  ;;  %v555_v60 = vmax.f32 %v551_v55, 0.0 }
 0x27b   :  { %556 = vst [vmem:[#allocation2 + $0x1] sm:$0xff] %v552_v12  ;;  %617 = vmatmul.f32.vlgmr.msra.gmra.mxu3 %v552_v12 }
 0x27c   :  { %557 = vst [vmem:[#allocation2 + $0x9] sm:$0xff] %v553_v57 }
 0x27d   :  { %558 = vst [vmem:[#allocation2 + $0x19] sm:$0xff] %v554_v56 }
 0x27e   :  { %559 = vst [vmem:[#allocation2 + $0x21] sm:$0xff] %v555_v60 }
 0x282   :  { %v560_v9 = vld [vmem:[#allocation2] sm:$0xff] }
 0x283   :  { %646 = vmatmul.f32.vlgmr.msrb.gmra.mxu0 %v560_v9  ;;  %v659_v13 = vld [vmem:[#allocation2 + $0x2] sm:$0xff]  ;;  %620 = vmatmul.f32.gmra.mxu3 %v553_v57  ;;  %v660_v61 = vld [vmem:[#allocation2 + $0xa] sm:$0xff] }
 0x284   :  { %v562_v18 = vld [vmem:[#allocation2 + $0x18] sm:$0xff]  ;;  %696 = vmatmul.f32.vlgmr.msrb.gmra.mxu1 %v659_v13  ;;  %v561_v58 = vld [vmem:[#allocation2 + $0x8] sm:$0xff] }
 0x285   :  { %652 = vmatmul.f32.vlgmr.msrb.gmra.mxu2 %v562_v18  ;;  %v563_v63 = vld [vmem:[#allocation2 + $0x20] sm:$0xff] }
 0x286   :  { %v661_v59 = vld [vmem:[#allocation2 + $0x1a] sm:$0xff]  ;;  %v662_v0 = vld [vmem:[#allocation2 + $0x22] sm:$0xff] }
 0x28b   :  { %649 = vmatmul.f32.gmra.mxu0 %v561_v58  ;;  %623 = vmatmul.f32.gmra.mxu3 %v554_v56 }
 0x28c   :  { %699 = vmatmul.f32.gmra.mxu1 %v660_v61 }
 0x28d   :  { %655 = vmatmul.f32.gmra.mxu2 %v563_v63 }
 0x293   :  { %626 = vmatmul.f32.gmra.mxu3 %v555_v60 }
 0x29b   :  { %702 = vmatmul.f32.vlgmr.msrb.gmra.mxu3 %v661_v59 }
 0x2a3   :  { %705 = vmatmul.f32.gmra.mxu3 %v662_v0 }
 0x2fe   :  { %v618_v4 = vpop.f32.mrf.mxu3 }
 0x300   :  { %v647_v6 = vpop.f32.mrf.mxu0 }
 0x301   :  { %v697_v11 = vpop.f32.mrf.mxu1  ;;  %v648_v22 = vadd.f32 %v647_v6, %v618_v4 }
 0x303   :  { %v1533_v29 = vadd.f32 %v697_v11, %v648_v22 }
 0x305   :  { %v722_v17 = vmul.f32 %v1533_v29, %v1533_v29 }
 0x306   :  { %v621_v5 = vpop.f32.mrf.mxu3 }
 0x308   :  { %v653_v16 = vpop.f32.mrf.mxu2  ;;  %v650_v19 = vpop.f32.mrf.mxu0 }
 0x309   :  { %v651_v20 = vadd.f32 %v650_v19, %v621_v5  ;;  %v700_v24 = vpop.f32.mrf.mxu1 }
 0x30b   :  { %v1531_v26 = vadd.f32 %v700_v24, %v651_v20 }
 0x30d   :  { %v713_v62 = vadd.f32 %v1531_v26, %v1533_v29  ;;  %v723_v43 = vmul.f32 %v1531_v26, %v1531_v26 }
 0x30e   :  { %v624_v2 = vpop.f32.mrf.mxu3 }
 0x30f   :  { %v654_v28 = vadd.f32 %v653_v16, %v624_v2  ;;  %v726_v21 = vadd.f32 %v723_v43, %v722_v17 }
 0x310   :  { %v656_v32 = vpop.f32.mrf.mxu2 }
 0x316   :  { %v627_v14 = vpop.f32.mrf.mxu3 }
 0x317   :  { %v657_v34 = vadd.f32 %v656_v32, %v627_v14 }
 0x31e   :  { %v703_v3 = vpop.f32.mrf.mxu3 }
 0x31f   :  { %v1535_v30 = vadd.f32 %v703_v3, %v654_v28 }
 0x321   :  { %v714_v7 = vadd.f32 %v713_v62, %v1535_v30  ;;  %v724_v1 = vmul.f32 %v1535_v30, %v1535_v30 }
 0x323   :  { %v727_v44 = vadd.f32 %v726_v21, %v724_v1 }
 0x326   :  { %v706_v35 = vpop.f32.mrf.mxu3 }
 0x327   :  { %v1540_v36 = vadd.f32 %v706_v35, %v657_v34 }
 0x329   :  { %v715_v38 = vadd.f32 %v714_v7, %v1540_v36  ;;  %v725_v23 = vmul.f32 %v1540_v36, %v1540_v36 }
 0x32b   :  { %v716_v39 = vrot.slane %v715_v38, 4  ;;  %v728_v27 = vadd.f32 %v727_v44, %v725_v23 }
 0x32d   :  { %v717_v15 = vadd.f32 %v716_v39, %v715_v38  ;;  %v729_v45 = vrot.slane %v728_v27, 4 }
 0x32f   :  { %v718_v10 = vrot.slane %v717_v15, 2  ;;  %v730_v25 = vadd.f32 %v729_v45, %v728_v27 }
 0x331   :  { %v719_v40 = vadd.f32 %v718_v10, %v717_v15  ;;  %v731_v48 = vrot.slane %v730_v25, 2 }
 0x333   :  { %v720_v41 = vrot.slane %v719_v40, 1  ;;  %v732_v31 = vadd.f32 %v731_v48, %v730_v25 }
 0x335   :  { %v721_v42 = vadd.f32 %v720_v41, %v719_v40  ;;  %v733_v49 = vrot.slane %v732_v31, 1 }
 0x337   :  { %744 = vrot.lane.b32.xlu2 %v721_v42, %s1213_s16  ;;  %740 = vrot.lane.b32.xlu1 %v721_v42, %s1217_s20  ;;  %v734_v33 = vadd.f32 %v733_v49, %v732_v31 }
 0x338   :  { %736 = vrot.lane.b32.xlu0 %v721_v42, %s1214_s17 }
 0x33f   :  { %756 = vrot.lane.b32.xlu2 %v721_v42, %s1220_s23  ;;  %752 = vrot.lane.b32.xlu1 %v721_v42, %s1216_s19 }
 0x340   :  { %748 = vrot.lane.b32.xlu0 %v721_v42, %s1212_s4 }
 0x347   :  { %760 = vrot.lane.b32.xlu2 %v721_v42, %s1215_s18  ;;  %764 = vrot.lane.b32.xlu1 %v721_v42, %s1219_s22 }
 0x348   :  { %768 = vrot.lane.b32.xlu0 %v721_v42, %s1223_s26 }
 0x34f   :  { %772 = vrot.lane.b32.xlu2 %v721_v42, %s1218_s21  ;;  %776 = vrot.lane.b32.xlu1 %v721_v42, %s1222_s25 }
 0x350   :  { %780 = vrot.lane.b32.xlu0 %v721_v42, %s1225_s28 }
 0x357   :  { %784 = vrot.lane.b32.xlu2 %v721_v42, %s1221_s24  ;;  %788 = vrot.lane.b32.xlu1 %v721_v42, %s1224_s27 }
 0x358   :  { %798 = vrot.lane.b32.xlu0 %v734_v33, %s1214_s17 }
 0x35f   :  { %806 = vrot.lane.b32.xlu2 %v734_v33, %s1213_s16  ;;  %802 = vrot.lane.b32.xlu1 %v734_v33, %s1217_s20 }
 0x360   :  { %810 = vrot.lane.b32.xlu0 %v734_v33, %s1212_s4 }
 0x367   :  { %822 = vrot.lane.b32.xlu2 %v734_v33, %s1215_s18  ;;  %814 = vrot.lane.b32.xlu1 %v734_v33, %s1216_s19 }
 0x368   :  { %818 = vrot.lane.b32.xlu0 %v734_v33, %s1220_s23 }
 0x36f   :  { %834 = vrot.lane.b32.xlu2 %v734_v33, %s1218_s21  ;;  %826 = vrot.lane.b32.xlu1 %v734_v33, %s1219_s22 }
 0x370   :  { %830 = vrot.lane.b32.xlu0 %v734_v33, %s1223_s26 }
 0x377   :  { %846 = vrot.lane.b32.xlu2 %v734_v33, %s1221_s24  ;;  %838 = vrot.lane.b32.xlu1 %v734_v33, %s1222_s25 }
 0x378   :  { %842 = vrot.lane.b32.xlu0 %v734_v33, %s1225_s28 }
 0x37f   :  { %854 = vrot.lane.b32.xlu2 %v734_v33, %s1208_s10  ;;  %850 = vrot.lane.b32.xlu1 %v734_v33, %s1224_s27 }
 0x380   :  { %792 = vrot.lane.b32.xlu0 %v721_v42, %s1208_s10 }
 0x391   :  { %v745_v8 = vpop.permute.xlu2 %744 }
 0x399   :  { %v757_v46 = vpop.permute.xlu2 %756 }
 0x3a1   :  { %v761_v50 = vpop.permute.xlu2 %760 }
 0x3a9   :  { %v741_v37 = vpop.permute.xlu1 %740  ;;  %v773_v52 = vpop.permute.xlu2 %772 }
 0x3aa   :  { %v737_v47 = vpop.permute.xlu0 %736 }
 0x3ab   :  { %v739_v60 = vadd.f32 %v737_v47, %v721_v42 }
 0x3ad   :  { %v743_v9 = vadd.f32 %v741_v37, %v739_v60 }
 0x3af   :  { %v747_v58 = vadd.f32 %v745_v8, %v743_v9 }
 0x3b1   :  { %v753_v51 = vpop.permute.xlu1 %752  ;;  %v785_v12 = vpop.permute.xlu2 %784 }
 0x3b2   :  { %v749_v53 = vpop.permute.xlu0 %748 }
 0x3b3   :  { %v751_v63 = vadd.f32 %v749_v53, %v747_v58 }
 0x3b5   :  { %v755_v0 = vadd.f32 %v753_v51, %v751_v63 }
 0x3b7   :  { %v759_v11 = vadd.f32 %v757_v46, %v755_v0 }
 0x3b9   :  { %v765_v54 = vpop.permute.xlu1 %764  ;;  %v807_v61 = vpop.permute.xlu2 %806  ;;  %v763_v19 = vadd.f32 %v761_v50, %v759_v11 }
 0x3ba   :  { %v769_v55 = vpop.permute.xlu0 %768 }
 0x3bb   :  { %v767_v28 = vadd.f32 %v765_v54, %v763_v19 }
 0x3bd   :  { %v771_v62 = vadd.f32 %v769_v55, %v767_v28 }
 0x3bf   :  { %v775_v15 = vadd.f32 %v773_v52, %v771_v62 }
 0x3c1   :  { %v777_v57 = vpop.permute.xlu1 %776  ;;  %v823_v14 = vpop.permute.xlu2 %822 }
 0x3c2   :  { %v781_v56 = vpop.permute.xlu0 %780  ;;  %v779_v10 = vadd.f32 %v777_v57, %v775_v15 }
 0x3c4   :  { %v783_v1 = vadd.f32 %v781_v56, %v779_v10 }
 0x3c6   :  { %v787_v23 = vadd.f32 %v785_v12, %v783_v1  ;;  %v861_v12 = vld [vmem:[%s1662_s5] sm:$0x1] }
 0x3c9   :  { %v789_v13 = vpop.permute.xlu1 %788  ;;  %v835_v32 = vpop.permute.xlu2 %834 }
 0x3ca   :  { %v799_v18 = vpop.permute.xlu0 %798  ;;  %v791_v27 = vadd.f32 %v789_v13, %v787_v23 }
 0x3cb   :  { %v801_v59 = vadd.f32 %v799_v18, %v734_v33  ;;  %v874_v18 = vld [vmem:[%s1663_s6] sm:$0x1]  ;;  %s1226_s6 = smov [#allocation9]  }
 0x3cc   :  { %s1031_s13 = sshll.u32 %s1226_s6, 4  ;;  %s1032_s13 = int_to_ptr.vmem [resolvable:$true] %s1031_s13 }
 0x3d1   :  { %v803_v4 = vpop.permute.xlu1 %802  ;;  %v847_v41 = vpop.permute.xlu2 %846 }
 0x3d2   :  { %v805_v5 = vadd.f32 %v803_v4, %v801_v59  ;;  %v811_v2 = vpop.permute.xlu0 %810 }
 0x3d4   :  { %v809_v6 = vadd.f32 %v807_v61, %v805_v5 }
 0x3d6   :  { %v813_v16 = vadd.f32 %v811_v2, %v809_v6 }
 0x3d9   :  { %v815_v20 = vpop.permute.xlu1 %814  ;;  %v855_v31 = vpop.permute.xlu2 %854 }
 0x3da   :  { %v817_v3 = vadd.f32 %v815_v20, %v813_v16  ;;  %v819_v22 = vpop.permute.xlu0 %818 }
 0x3dc   :  { %v821_v24 = vadd.f32 %v819_v22, %v817_v3 }
 0x3de   :  { %v825_v34 = vadd.f32 %v823_v14, %v821_v24 }
 0x3e1   :  { %v827_v35 = vpop.permute.xlu1 %826 }
 0x3e2   :  { %v829_v7 = vadd.f32 %v827_v35, %v825_v34  ;;  %v831_v38 = vpop.permute.xlu0 %830 }
 0x3e4   :  { %v833_v39 = vadd.f32 %v831_v38, %v829_v7 }
 0x3e6   :  { %v837_v40 = vadd.f32 %v835_v32, %v833_v39 }
 0x3e9   :  { %v839_v42 = vpop.permute.xlu1 %838 }
 0x3ea   :  { %v841_v43 = vadd.f32 %v839_v42, %v837_v40  ;;  %v843_v17 = vpop.permute.xlu0 %842 }
 0x3ec   :  { %v845_v21 = vadd.f32 %v843_v17, %v841_v43 }
 0x3ee   :  { %v849_v44 = vadd.f32 %v847_v41, %v845_v21 }
 0x3f1   :  { %v851_v45 = vpop.permute.xlu1 %850 }
 0x3f2   :  { %v853_v25 = vadd.f32 %v851_v45, %v849_v44  ;;  %v793_v48 = vpop.permute.xlu0 %792 }
 0x3f3   :  { %v795_v49 = vadd.f32 %v793_v48, %v791_v27 }
 0x3f4   :  { %v857_v33 = vadd.f32 %v855_v31, %v853_v25 }
 0x3f5   :  { %v796_v8 = vmul.f32 0.001953125, %v795_v49 }
 0x3f6   :  { %v858_v46 = vmul.f32 0.001953125, %v857_v33 }
 0x3f7   :  { %v859_v37 = vmul.f32 %v796_v8, %v796_v8 }
 0x3f9   :  { %v860_v47 = vsub.f32 %v858_v46, %v859_v37 }
 0x3fb   :  { %v862_v50 = vadd.f32 1e-05, %v860_v47 }
 0x3fd   :  { %1102 = vrsqrt.f32 %v862_v50  ;;  %vm869_vm1 = vweird.f32 %v862_v50 }
 0x403   :  { %v1103_v51 = vpop.eup %1102 }
 0x404   :  { %v864_v53 = vmul.f32 %v1103_v51, %v862_v50  ;;  %vm870_vm2 = vweird.f32 %v1103_v51 }
 0x405   :  { %vm871_vm0 = vmor %vm869_vm1, %vm870_vm2 }
 0x406   :  { %v865_v52 = vmul.f32 %v1103_v51, %v864_v53 }
 0x408   :  { %v866_v54 = vmul.f32 0.5, %v865_v52 }
 0x40a   :  { %v867_v55 = vsub.f32 1.5, %v866_v54 }
 0x40c   :  { %v868_v57 = vmul.f32 %v1103_v51, %v867_v55 }
 0x40e   :  { %v872_v56 = vsel %vm871_vm0, %v1103_v51, %v868_v57 }
 0x40f   :  { %v873_v60 = vmul.f32 %v872_v56, %v861_v12 }
 0x411   :  { %v878_v9 = vperm.slane %v873_v60, 0  ;;  %v875_v13 = vmul.f32 %v873_v60, %v796_v8 }
 0x413   :  { %885 = vrot.lane.b32.xlu2 %v878_v9, %s1221_s24  ;;  %882 = vrot.lane.b32.xlu1 %v878_v9, %s1224_s27  ;;  %v876_v58 = vsub.f32 %v874_v18, %v875_v13 }
 0x414   :  { %879 = vrot.lane.b32.xlu0 %v878_v9, %s1208_s10 }
 0x415   :  { %v940_v61 = vperm.slane %v876_v58, 0 }
 0x41b   :  { %894 = vrot.lane.b32.xlu2 %v878_v9, %s1218_s21  ;;  %891 = vrot.lane.b32.xlu1 %v878_v9, %s1222_s25 }
 0x41c   :  { %888 = vrot.lane.b32.xlu0 %v878_v9, %s1225_s28 }
 0x423   :  { %903 = vrot.lane.b32.xlu2 %v878_v9, %s1215_s18  ;;  %900 = vrot.lane.b32.xlu1 %v878_v9, %s1219_s22 }
 0x424   :  { %897 = vrot.lane.b32.xlu0 %v878_v9, %s1223_s26 }
 0x42b   :  { %912 = vrot.lane.b32.xlu2 %v878_v9, %s1212_s4  ;;  %906 = vrot.lane.b32.xlu1 %v878_v9, %s1220_s23 }
 0x42c   :  { %909 = vrot.lane.b32.xlu0 %v878_v9, %s1216_s19 }
 0x433   :  { %921 = vrot.lane.b32.xlu2 %v878_v9, %s1214_s17  ;;  %915 = vrot.lane.b32.xlu1 %v878_v9, %s1213_s16 }
 0x434   :  { %918 = vrot.lane.b32.xlu0 %v878_v9, %s1217_s20 }
 0x43b   :  { %947 = vrot.lane.b32.xlu2 %v940_v61, %s1221_s24  ;;  %944 = vrot.lane.b32.xlu1 %v940_v61, %s1224_s27 }
 0x43c   :  { %941 = vrot.lane.b32.xlu0 %v940_v61, %s1208_s10 }
 0x443   :  { %956 = vrot.lane.b32.xlu2 %v940_v61, %s1218_s21  ;;  %953 = vrot.lane.b32.xlu1 %v940_v61, %s1222_s25 }
 0x444   :  { %950 = vrot.lane.b32.xlu0 %v940_v61, %s1225_s28 }
 0x44b   :  { %962 = vrot.lane.b32.xlu2 %v940_v61, %s1219_s22  ;;  %965 = vrot.lane.b32.xlu1 %v940_v61, %s1215_s18 }
 0x44c   :  { %959 = vrot.lane.b32.xlu0 %v940_v61, %s1223_s26 }
 0x453   :  { %971 = vrot.lane.b32.xlu2 %v940_v61, %s1216_s19  ;;  %974 = vrot.lane.b32.xlu1 %v940_v61, %s1212_s4 }
 0x454   :  { %968 = vrot.lane.b32.xlu0 %v940_v61, %s1220_s23 }
 0x45b   :  { %983 = vrot.lane.b32.xlu2 %v940_v61, %s1214_s17  ;;  %980 = vrot.lane.b32.xlu1 %v940_v61, %s1217_s20 }
 0x45c   :  { %977 = vrot.lane.b32.xlu0 %v940_v61, %s1213_s16 }
 0x46d   :  { %v886_v63 = vpop.permute.xlu2 %885 }
 0x475   :  { %v895_v59 = vpop.permute.xlu2 %894 }
 0x47d   :  { %v904_v5 = vpop.permute.xlu2 %903 }
 0x485   :  { %v883_v0 = vpop.permute.xlu1 %882  ;;  %v913_v11 = vpop.permute.xlu2 %912 }
 0x486   :  { %v880_v4 = vpop.permute.xlu0 %879 }
 0x487   :  { %v924_v28 = vsel %vm450_vm3, %v873_v60, %v880_v4 }
 0x488   :  { %v925_v34 = vsel %vm452_vm4, %v924_v28, %v883_v0 }
 0x489   :  { %v926_v35 = vsel %vm454_vm5, %v925_v34, %v886_v63 }
 0x48d   :  { %v892_v2 = vpop.permute.xlu1 %891  ;;  %v922_v20 = vpop.permute.xlu2 %921 }
 0x48e   :  { %v889_v6 = vpop.permute.xlu0 %888 }
 0x48f   :  { %v927_v38 = vsel %vm456_vm6, %v926_v35, %v889_v6  ;;  %v1011_v6 = vld [vmem:[#allocation3] sm:$0xff] }
 0x490   :  { %v928_v39 = vsel %vm458_vm7, %v927_v38, %v892_v2 }
 0x491   :  { %v929_v40 = vsel %vm460_vm8, %v928_v39, %v895_v59 }
 0x495   :  { %v901_v14 = vpop.permute.xlu1 %900  ;;  %v948_v32 = vpop.permute.xlu2 %947 }
 0x496   :  { %v898_v16 = vpop.permute.xlu0 %897 }
 0x497   :  { %v930_v42 = vsel %vm462_vm9, %v929_v40, %v898_v16  ;;  %v1014_v16 = vld [vmem:[#allocation3 + $0x18] sm:$0xff] }
 0x498   :  { %v931_v1 = vsel %vm464_vm10, %v930_v42, %v901_v14  ;;  %v1013_v14 = vld [vmem:[#allocation3 + $0x10] sm:$0xff] }
 0x499   :  { %v932_v44 = vsel %vm466_vm11, %v931_v1, %v904_v5 }
 0x49d   :  { %v907_v19 = vpop.permute.xlu1 %906  ;;  %v957_v15 = vpop.permute.xlu2 %956 }
 0x49e   :  { %v910_v3 = vpop.permute.xlu0 %909  ;;  %v933_v45 = vsel %vm468_vm12, %v932_v44, %v907_v19 }
 0x49f   :  { %v934_v49 = vsel %vm470_vm13, %v933_v45, %v910_v3 }
 0x4a0   :  { %v935_v46 = vsel %vm472_vm14, %v934_v49, %v913_v11  ;;  %v1012_v11 = vld [vmem:[#allocation3 + $0x8] sm:$0xff] }
 0x4a5   :  { %v916_v22 = vpop.permute.xlu1 %915  ;;  %v963_v27 = vpop.permute.xlu2 %962 }
 0x4a6   :  { %v919_v24 = vpop.permute.xlu0 %918  ;;  %v936_v37 = vsel %vm474_vm15, %v935_v46, %v916_v22 }
 0x4ad   :  { %v945_v62 = vpop.permute.xlu1 %944  ;;  %v972_v51 = vpop.permute.xlu2 %971 }
 0x4ae   :  { %v942_v7 = vpop.permute.xlu0 %941 }
 0x4af   :  { %v986_v10 = vsel %vm450_vm3, %v876_v58, %v942_v7  ;;  %vm1667_vm3 = vcmask 916480  }
 0x4b0   :  { %v987_v43 = vsel %vm452_vm4, %v986_v10, %v945_v62  ;;  %v937_v52 = vsel %vm1667_vm3, %v936_v37, %v919_v24  ;;  %vm1668_vm4 = vcmask 982016  }
 0x4b1   :  { %v988_v21 = vsel %vm454_vm5, %v987_v43, %v948_v32  ;;  %v938_v12 = vsel %vm1668_vm4, %v937_v52, %v922_v20  ;;  %vm1669_vm5 = vmmov %vm1667_vm3 }
 0x4b2   :  { %v1001_v56 = vperm.slane %v938_v12, 0 }
 0x4b4   :  { %v1002_v63 = vmul.f32 %v1001_v56, %v1533_v29  ;;  %v1003_v0 = vmul.f32 %v1001_v56, %v1531_v26  ;;  %v1004_v4 = vmul.f32 %v1001_v56, %v1535_v30  ;;  %v1005_v5 = vmul.f32 %v1001_v56, %v1540_v36 }
 0x4b5   :  { %v954_v41 = vpop.permute.xlu1 %953  ;;  %v984_v58 = vpop.permute.xlu2 %983 }
 0x4b6   :  { %v951_v17 = vpop.permute.xlu0 %950 }
 0x4b7   :  { %v989_v23 = vsel %vm456_vm6, %v988_v21, %v951_v17  ;;  %vm1670_vm6 = vmmov %vm1668_vm4 }
 0x4b8   :  { %v990_v25 = vsel %vm458_vm7, %v989_v23, %v954_v41 }
 0x4b9   :  { %v991_v33 = vsel %vm460_vm8, %v990_v25, %v957_v15 }
 0x4bd   :  { %v966_v48 = vpop.permute.xlu1 %965 }
 0x4be   :  { %v960_v31 = vpop.permute.xlu0 %959 }
 0x4bf   :  { %v992_v8 = vsel %vm462_vm9, %v991_v33, %v960_v31 }
 0x4c0   :  { %v993_v47 = vsel %vm464_vm10, %v992_v8, %v963_v27 }
 0x4c1   :  { %v994_v54 = vsel %vm466_vm11, %v993_v47, %v966_v48 }
 0x4c5   :  { %v975_v50 = vpop.permute.xlu1 %974 }
 0x4c6   :  { %v969_v53 = vpop.permute.xlu0 %968 }
 0x4c7   :  { %v995_v55 = vsel %vm468_vm12, %v994_v54, %v969_v53 }
 0x4c8   :  { %v996_v57 = vsel %vm470_vm13, %v995_v55, %v972_v51 }
 0x4c9   :  { %v997_v9 = vsel %vm472_vm14, %v996_v57, %v975_v50 }
 0x4cd   :  { %v981_v60 = vpop.permute.xlu1 %980 }
 0x4ce   :  { %v978_v13 = vpop.permute.xlu0 %977 }
 0x4cf   :  { %v998_v18 = vsel %vm474_vm15, %v997_v9, %v978_v13 }
 0x4d0   :  { %v999_v61 = vsel %vm1669_vm5, %v998_v18, %v981_v60 }
 0x4d1   :  { %v1000_v59 = vsel %vm1670_vm6, %v999_v61, %v984_v58 }
 0x4d2   :  { %v1006_v2 = vperm.slane %v1000_v59, 0 }
 0x4d4   :  { %v1007_v19 = vadd.f32 %v1006_v2, %v1002_v63  ;;  %v1008_v20 = vadd.f32 %v1006_v2, %v1003_v0  ;;  %v1009_v3 = vadd.f32 %v1006_v2, %v1004_v4  ;;  %v1010_v22 = vadd.f32 %v1006_v2, %v1005_v5 }
 0x4d6   :  { %v1015_v24 = vadd.f32 %v1011_v6, %v1007_v19  ;;  %v1016_v28 = vadd.f32 %v1012_v11, %v1008_v20  ;;  %v1017_v29 = vadd.f32 %v1013_v14, %v1009_v3  ;;  %v1018_v32 = vadd.f32 %v1014_v16, %v1010_v22 }
 0x4d8   :  { %v1019_v34 = vmax.f32 %v1015_v24, 0.0  ;;  %v1020_v62 = vmax.f32 %v1016_v28, 0.0  ;;  %v1021_v26 = vmax.f32 %v1017_v29, 0.0  ;;  %v1022_v30 = vmax.f32 %v1018_v32, 0.0 }
 0x4da   :  { %1023 = vst [vmem:[#allocation9] sm:$0xff] %v1019_v34 }
 0x4db   :  { %1024 = vst [vmem:[#allocation9 + $0x8] sm:$0xff] %v1020_v62 }
 0x4dc   :  { %1025 = vst [vmem:[#allocation9 + $0x10] sm:$0xff] %v1021_v26 }
 0x4dd   :  { %1026 = vst [vmem:[#allocation9 + $0x18] sm:$0xff] %v1022_v30 }
 0x4de   :  { %1039 = dma.vmem_to_hbm [thread:$0]  %s1032_s13, 512, %s1034_s0, [#allocation5], %s1207_s9, %s1207_s9, %s1208_s10  }
 0x4df   :  { %1204 = dma.done.wait [#allocation5], 512  }
 0x4e0   :  { %1205 = vsyncadd [#allocation5], 4294966784 }
 0x4e1   :  { %1044 = vsyncpa [#allocation4], 1 }
 0x4e2   :  { %1045 = vsyncpa [#allocation7], 1 }
 0x4e3   :  { %1046 = vsyncpa [#allocation5], 1 }

</bundles_post_ra>
